<compile_context>
chip_gen: v7x
topology: tpu7x:2x2x1
jax: 0.10.0
libtpu: 0.0.40
codegen_flags: <defaults>
</compile_context>

<pallas_src>
import jax
import jax.numpy as jnp
from jax.experimental import pallas as pl
from jax.experimental.pallas import tpu as pltpu


def fcnet_kernel(x_ref, v1_ref, s1_ref, b1_ref, v2_ref, s2_ref, b2_ref, o_ref):
    """Fused 2-layer weight-norm MLP: relu((relu((x@v1)*s1 + b1) @ v2)*s2 + b2).

    Matmuls use bf16 operands with f32 MXU accumulation; the weight-norm scalar
    g/||v||_F (precomputed in the wrapper) is applied post-matmul in f32 together
    with the bias and ReLU on the VPU. The f32->bf16 cast of the incoming activation
    tile happens here so the wrapper never re-writes x through HBM.
    """
    x = x_ref[...].astype(v1_ref.dtype)                       # in-kernel bf16 cast
    h = jnp.dot(x, v1_ref[...], preferred_element_type=jnp.float32)
    h = jnp.maximum(h * s1_ref[0, 0] + b1_ref[...], 0.0)

    out = jnp.dot(h.astype(v2_ref.dtype), v2_ref[...],
                  preferred_element_type=jnp.float32)
    out = jnp.maximum(out * s2_ref[0, 0] + b2_ref[...], 0.0)
    o_ref[...] = out.astype(o_ref.dtype)


def _round_up(x, m):
    return (x + m - 1) // m * m


def _tile_bytes(rows, cols, itemsize):
    # VMEM tiles pad to (sublane, lane); pad rows to 16 to cover bf16 packing
    # (slight over-estimate for f32 rows is harmless for a budget).
    return _round_up(rows, 16) * _round_up(cols, 128) * itemsize


def fcnet_forward(x, params, *, block_b=512):
    """x: (B, d0) f32; params: v1 (d0,d1), g1 (1,1), b1 (1,d1), v2 (d1,d2), g2, b2."""
    B, d0 = x.shape
    d1 = params["v1"].shape[1]
    d2 = params["v2"].shape[1]

    # ---- batch tile selection -------------------------------------------------
    TB = min(block_b, B)
    if TB >= B and B > 16:
        # Whole batch would fit in one tile: split so the grid has >= 2 steps
        # (software-pipelining overlap; work to split across cores).
        TB = pl.cdiv(B, 2)
    TB = max(16, (TB // 16) * 16)          # multiple of 16 (bf16 sublane packing)
    grid = (pl.cdiv(B, TB),)               # boundary block handled by Pallas; no jnp.pad

    # ---- hoisted weight-norm scalars (one tiny XLA reduction, not per step) ----
    s1 = (params["g1"][0, 0] *
          jax.lax.rsqrt(jnp.sum(params["v1"] * params["v1"]))).reshape(1, 1).astype(jnp.float32)
    s2 = (params["g2"][0, 0] *
          jax.lax.rsqrt(jnp.sum(params["v2"] * params["v2"]))).reshape(1, 1).astype(jnp.float32)

    # bf16 weights (halves resident VMEM + weight DMA); f32 biases; x stays f32 and
    # is cast inside the kernel so it is read from HBM exactly once.
    v1_bf = params["v1"].astype(jnp.bfloat16)
    v2_bf = params["v2"].astype(jnp.bfloat16)
    b1 = params["b1"].astype(jnp.float32)
    b2 = params["b2"].astype(jnp.float32)

    smem_scalar = pl.BlockSpec((1, 1), lambda i: (0, 0),
                               memory_space=pltpu.MemorySpace.SMEM)
    in_specs = [
        pl.BlockSpec((TB, d0), lambda i: (i, 0)),   # x tile (pipelined over batch)
        pl.BlockSpec((d0, d1), lambda i: (0, 0)),   # v1 resident
        smem_scalar,                                # s1 = g1 / ||v1||_F
        pl.BlockSpec((1, d1), lambda i: (0, 0)),    # b1 resident
        pl.BlockSpec((d1, d2), lambda i: (0, 0)),   # v2 resident
        smem_scalar,                                # s2 = g2 / ||v2||_F
        pl.BlockSpec((1, d2), lambda i: (0, 0)),    # b2 resident
    ]
    out_specs = pl.BlockSpec((TB, d2), lambda i: (i, 0))

    # ---- exact VMEM budget ------------------------------------------------------
    # Every block counted at its padded tile size times its buffer count (Pallas
    # double-buffers every VMEM input/output by default, including the constant-index
    # resident weights, which are not re-fetched but whose 2nd buffer is allocated).
    vmem_need = (
        2 * _tile_bytes(TB, d0, 4)      # x tile, f32, double-buffered
        + 2 * _tile_bytes(d0, d1, 2)    # v1 bf16 (default double-buffered)
        + 2 * _tile_bytes(1, d1, 4)     # b1 f32
        + 2 * _tile_bytes(d1, d2, 2)    # v2 bf16
        + 2 * _tile_bytes(1, d2, 4)     # b2 f32
        + 2 * _tile_bytes(TB, d2, 4)    # out tile, f32, double-buffered
        + _tile_bytes(TB, d0, 2)        # in-kernel bf16 cast of x
        + _tile_bytes(TB, d1, 4)        # h (f32 activation)
        + _tile_bytes(TB, d1, 2)        # bf16 cast of h
    )
    try:
        vmem_phys = pltpu.get_tpu_info().vmem_capacity_bytes
    except Exception:  # older runtimes without get_tpu_info
        vmem_phys = 64 << 20            # v7x per-TC physical VMEM (smallest part)
    vmem_limit = int(min(vmem_need + (8 << 20), vmem_phys - (8 << 20)))

    out = pl.pallas_call(
        fcnet_kernel,
        out_shape=jax.ShapeDtypeStruct((B, d2), jnp.float32),
        grid=grid,
        in_specs=in_specs,
        out_specs=out_specs,
        compiler_params=pltpu.CompilerParams(
            dimension_semantics=(pltpu.PARALLEL,),   # batch axis is embarrassingly parallel
            vmem_limit_bytes=vmem_limit,
        ),
    )(x, v1_bf, s1, b1, v2_bf, s2, b2)
    return out


def init_params(key, dims):
    """Shapes of FCNet(dims) with weight_norm(dim=None); v stored transposed (in,out).
    PyTorch weight_norm init: g = ||v||_F."""
    assert len(dims) == 3, "this script instantiates a 2-layer FCNet"
    k1, k2, k3, k4 = jax.random.split(key, 4)

    def linear_init(kw, kb, fan_in, fan_out):
        bound = 1.0 / jnp.sqrt(fan_in)
        v = jax.random.uniform(kw, (fan_in, fan_out), jnp.float32, -bound, bound)
        b = jax.random.uniform(kb, (1, fan_out), jnp.float32, -bound, bound)
        g = jnp.sqrt(jnp.sum(v * v)).reshape(1, 1)
        return v, g, b

    v1, g1, b1 = linear_init(k1, k2, dims[0], dims[1])
    v2, g2, b2 = linear_init(k3, k4, dims[1], dims[2])
    return {"v1": v1, "g1": g1, "b1": b1, "v2": v2, "g2": g2, "b2": b2}


def fcnet_reference_f32(x, p):
    """Exact f32 reference of FCNet.forward (dropout=0, act='ReLU', weight_norm dim=None)."""
    w1 = p["v1"] * (p["g1"][0, 0] / jnp.linalg.norm(p["v1"]))
    h = jnp.maximum(x @ w1 + p["b1"], 0.0)
    w2 = p["v2"] * (p["g2"][0, 0] / jnp.linalg.norm(p["v2"]))
    return jnp.maximum(h @ w2 + p["b2"], 0.0)


def fcnet_reference_bf16(x, p):
    """Reference mirroring the kernel's numerics (bf16 operands, f32 accumulate)."""
    s1 = p["g1"][0, 0] * jax.lax.rsqrt(jnp.sum(p["v1"] * p["v1"]))
    s2 = p["g2"][0, 0] * jax.lax.rsqrt(jnp.sum(p["v2"] * p["v2"]))
    h = jnp.dot(x.astype(jnp.bfloat16), p["v1"].astype(jnp.bfloat16),
                preferred_element_type=jnp.float32)
    h = jnp.maximum(h * s1 + p["b1"], 0.0)
    out = jnp.dot(h.astype(jnp.bfloat16), p["v2"].astype(jnp.bfloat16),
                  preferred_element_type=jnp.float32)
    return jnp.maximum(out * s2 + p["b2"], 0.0)


if __name__ == "__main__":
    key = jax.random.PRNGKey(0)
    kx, kp = jax.random.split(key)

    # Lane-dense feature dims (multiples of 128). Batch 1000 is deliberately NOT a
    # multiple of the 512-row tile: it exercises the no-pad boundary-block path while
    # still giving a 2-step grid with the default block_b=512.
    dims = [128, 256, 128]
    batch = 1000
    x = jax.random.normal(kx, (batch, dims[0]), jnp.float32)
    params = init_params(kp, dims)

    out = jax.block_until_ready(fcnet_forward(x, params, block_b=512))

    ref_bf16 = fcnet_reference_bf16(x, params)
    ref_f32 = fcnet_reference_f32(x, params)
    assert out.shape == (batch, dims[-1])
    assert jnp.allclose(out, ref_bf16, atol=1e-2, rtol=1e-2), "mismatch vs bf16 reference"
    assert float(jnp.max(jnp.abs(out - ref_f32))) < 1e-1, "drifted from exact f32 weight-norm reference"

    print("KERNEL_OK")
</pallas_src>

<mosaic_0001>
module attributes {stable_mosaic.version = 11 : i64} {
  func.func @fcnet_kernel(%arg0: i32, %arg1: memref<512x128xf32, #tpu.memory_space<vmem>>, %arg2: memref<128x256xbf16, #tpu.memory_space<vmem>>, %arg3: memref<1x1xf32, #tpu.memory_space<smem>>, %arg4: memref<1x256xf32, #tpu.memory_space<vmem>>, %arg5: memref<256x128xbf16, #tpu.memory_space<vmem>>, %arg6: memref<1x1xf32, #tpu.memory_space<smem>>, %arg7: memref<1x128xf32, #tpu.memory_space<vmem>>, %arg8: memref<512x128xf32, #tpu.memory_space<vmem>>) attributes {dimension_semantics = [#tpu.dimension_semantics<parallel>], iteration_bounds = array<i64: 2>, scalar_prefetch = 0 : i64, scratch_operands = 0 : i64, tpu.core_type = #tpu.core_type<tc>, window_params = [{transform_indices = @transform_0, window_bounds = array<i64: 512, 128>}, {pipeline_mode = #tpu.pipeline_mode<synchronous>, transform_indices = @transform_1, window_bounds = array<i64: 128, 256>}, {transform_indices = @transform_2, window_bounds = array<i64: 1, 1>}, {pipeline_mode = #tpu.pipeline_mode<synchronous>, transform_indices = @transform_3, window_bounds = array<i64: 1, 256>}, {pipeline_mode = #tpu.pipeline_mode<synchronous>, transform_indices = @transform_4, window_bounds = array<i64: 256, 128>}, {transform_indices = @transform_5, window_bounds = array<i64: 1, 1>}, {pipeline_mode = #tpu.pipeline_mode<synchronous>, transform_indices = @transform_6, window_bounds = array<i64: 1, 128>}, {transform_indices = @transform_7, window_bounds = array<i64: 512, 128>}]} {
    %c0 = arith.constant 0 : index
    %c0_0 = arith.constant 0 : index
    %0 = vector.load %arg1[%c0, %c0_0] : memref<512x128xf32, #tpu.memory_space<vmem>>, vector<512x128xf32>
    %1 = arith.truncf %0 : vector<512x128xf32> to vector<512x128xbf16>
    %c0_1 = arith.constant 0 : index
    %c0_2 = arith.constant 0 : index
    %2 = vector.load %arg2[%c0_1, %c0_2] : memref<128x256xbf16, #tpu.memory_space<vmem>>, vector<128x256xbf16>
    %cst = arith.constant dense<0.000000e+00> : vector<512x256xf32>
    %3 = tpu.matmul %1, %2, %cst {dimension_numbers = #tpu.dot_dimension_numbers<[1], [0], [0], [1], [0, 0, 1, 1], [], []>} : vector<512x128xbf16>, vector<128x256xbf16>, vector<512x256xf32> -> vector<512x256xf32>
    %c0_3 = arith.constant 0 : index
    %c0_4 = arith.constant 0 : index
    %4 = memref.load %arg3[%c0_3, %c0_4] : memref<1x1xf32, #tpu.memory_space<smem>>
    %5 = vector.broadcast %4 : f32 to vector<512x256xf32>
    %6 = arith.mulf %3, %5 : vector<512x256xf32>
    %c0_5 = arith.constant 0 : index
    %c0_6 = arith.constant 0 : index
    %7 = vector.load %arg4[%c0_5, %c0_6] : memref<1x256xf32, #tpu.memory_space<vmem>>, vector<1x256xf32>
    %8 = vector.broadcast %7 : vector<1x256xf32> to vector<512x256xf32>
    %9 = arith.addf %6, %8 : vector<512x256xf32>
    %cst_7 = arith.constant 0.000000e+00 : f32
    %10 = vector.broadcast %cst_7 : f32 to vector<512x256xf32>
    %11 = arith.maximumf %9, %10 : vector<512x256xf32>
    %12 = arith.truncf %11 : vector<512x256xf32> to vector<512x256xbf16>
    %c0_8 = arith.constant 0 : index
    %c0_9 = arith.constant 0 : index
    %13 = vector.load %arg5[%c0_8, %c0_9] : memref<256x128xbf16, #tpu.memory_space<vmem>>, vector<256x128xbf16>
    %cst_10 = arith.constant dense<0.000000e+00> : vector<512x128xf32>
    %14 = tpu.matmul %12, %13, %cst_10 {dimension_numbers = #tpu.dot_dimension_numbers<[1], [0], [0], [1], [0, 0, 1, 1], [], []>} : vector<512x256xbf16>, vector<256x128xbf16>, vector<512x128xf32> -> vector<512x128xf32>
    %c0_11 = arith.constant 0 : index
    %c0_12 = arith.constant 0 : index
    %15 = memref.load %arg6[%c0_11, %c0_12] : memref<1x1xf32, #tpu.memory_space<smem>>
    %16 = vector.broadcast %15 : f32 to vector<512x128xf32>
    %17 = arith.mulf %14, %16 : vector<512x128xf32>
    %c0_13 = arith.constant 0 : index
    %c0_14 = arith.constant 0 : index
    %18 = vector.load %arg7[%c0_13, %c0_14] : memref<1x128xf32, #tpu.memory_space<vmem>>, vector<1x128xf32>
    %19 = vector.broadcast %18 : vector<1x128xf32> to vector<512x128xf32>
    %20 = arith.addf %17, %19 : vector<512x128xf32>
    %cst_15 = arith.constant 0.000000e+00 : f32
    %21 = vector.broadcast %cst_15 : f32 to vector<512x128xf32>
    %22 = arith.maximumf %20, %21 : vector<512x128xf32>
    %c0_16 = arith.constant 0 : index
    %c0_17 = arith.constant 0 : index
    %23 = vector.load %arg8[%c0_16, %c0_17] : memref<512x128xf32, #tpu.memory_space<vmem>>, vector<512x128xf32>
    tpu.vector_store %arg8[%c0_16, %c0_17], %22 {strides = array<i32>} : memref<512x128xf32, #tpu.memory_space<vmem>>, vector<512x128xf32>,
    return
  }
  func.func @transform_0(%arg0: i32) -> (i32, i32) {
    %c0_i32 = arith.constant 0 : i32
    %c0_i32_0 = arith.constant 0 : i32
    return %arg0, %c0_i32 : i32, i32
  }
  func.func @transform_1(%arg0: i32) -> (i32, i32) {
    %c0_i32 = arith.constant 0 : i32
    %c0_i32_0 = arith.constant 0 : i32
    %c0_i32_1 = arith.constant 0 : i32
    return %c0_i32, %c0_i32_0 : i32, i32
  }
  func.func @transform_2(%arg0: i32) -> (i32, i32) {
    %c0_i32 = arith.constant 0 : i32
    %c0_i32_0 = arith.constant 0 : i32
    %c0_i32_1 = arith.constant 0 : i32
    return %c0_i32, %c0_i32_0 : i32, i32
  }
  func.func @transform_3(%arg0: i32) -> (i32, i32) {
    %c0_i32 = arith.constant 0 : i32
    %c0_i32_0 = arith.constant 0 : i32
    %c0_i32_1 = arith.constant 0 : i32
    return %c0_i32, %c0_i32_0 : i32, i32
  }
  func.func @transform_4(%arg0: i32) -> (i32, i32) {
    %c0_i32 = arith.constant 0 : i32
    %c0_i32_0 = arith.constant 0 : i32
    %c0_i32_1 = arith.constant 0 : i32
    return %c0_i32, %c0_i32_0 : i32, i32
  }
  func.func @transform_5(%arg0: i32) -> (i32, i32) {
    %c0_i32 = arith.constant 0 : i32
    %c0_i32_0 = arith.constant 0 : i32
    %c0_i32_1 = arith.constant 0 : i32
    return %c0_i32, %c0_i32_0 : i32, i32
  }
  func.func @transform_6(%arg0: i32) -> (i32, i32) {
    %c0_i32 = arith.constant 0 : i32
    %c0_i32_0 = arith.constant 0 : i32
    %c0_i32_1 = arith.constant 0 : i32
    return %c0_i32, %c0_i32_0 : i32, i32
  }
  func.func @transform_7(%arg0: i32) -> (i32, i32) {
    %c0_i32 = arith.constant 0 : i32
    %c0_i32_0 = arith.constant 0 : i32
    return %arg0, %c0_i32 : i32, i32
  }
}

</mosaic_0001>

<bundles_post_ra>
// kernel: tpu_custom_call.1
= control target key start
LH: loop header
LB: loop body
LE: loop exit
PB: predicated region body
PF: predicated region fallthrough
CT: control target
= control target key end

     0   :  { %s3421_s0 = inlined_call_operand.hbm [shape: f32[1000,128], index: 0, kind: input, shape index: {}]   ;;  %s3422_s1 = inlined_call_operand.hbm [shape: bf16[128,256], index: 1, kind: input, shape index: {}]   ;;  %s3423_s2 = inlined_call_operand.<no memory space> [shape: f32[1,1], index: 2, kind: input, shape index: {}]   ;;  %s3424_s3 = inlined_call_operand.vmem [shape: f32[1,256], index: 3, kind: input, shape index: {}]   ;;  %s3425_s4 = inlined_call_operand.hbm [shape: bf16[256,128], index: 4, kind: input, shape index: {}]   ;;  %s3426_s5 = inlined_call_operand.<no memory space> [shape: f32[1,1], index: 5, kind: input, shape index: {}]   ;;  %s3427_s6 = inlined_call_operand.vmem [shape: f32[1,128], index: 6, kind: input, shape index: {}]   ;;  %s3428_s7 = inlined_call_operand.hbm [shape: f32[1000,128], index: 7, kind: output, shape index: {}]  }
   0x1   :  { %12 = sst [smem:[#allocation2]] %s3423_s2 }
   0x2   :  { %13 = sst [smem:[#allocation3]] %s3426_s5 }
   0x3   :  { %14 = vsyncpa [#allocation5], 0 }
   0x4   :  { %16 = vsyncpa [#allocation5 + $0x1], 0 }
   0x5   :  { %17 = vsyncpa [#allocation8], 0 }
   0x6   :  { %18 = vsyncpa [#allocation6], 0 }
   0x7   :  { %20 = vsyncpa [#allocation6 + $0x1], 0  ;;  %s2563_s28 = smov 0   ;;  %s2565_s29 = smov 0  }
   0x8   :  { %s2567_s30 = smov 0   ;;  %s2569_s8 = smov 0  }
   0x9 LB: > { %s2584_s2 = sadd.s32 4294967295, %s2502_s8   ;;  %s2146_s5 = sadd.s32 4294967294, %s2502_s8   ;;  %s2502_s8 = sphi %s2569_s8, %s3450_s8   ;;  %s2498_s30 = sphi %s2567_s30, %s3449_s30   ;;  %s2494_s29 = sphi %s2565_s29, %s3448_s29   ;;  %s2490_s28 = sphi %s2563_s28, %s3447_s28  }
   0xa   : > { %s2588_s9 = sadd.s32 1, %s2502_s8   ;;  %s33_s10 = sadd.s32 1, %s2498_s30 }
   0xb   : > { %s30_s11 = ssub.s32 %s2502_s8, %s2588_s9  ;;  %p40_p0 = scmp.ne.s32.totalorder %s2498_s30, %s2494_s29 }
   0xc   : > { %p31_p1 = scmp.eq.s32.totalorder %s30_s11, 0  ;;  %p41_p2 = scmp.eq.s32.totalorder %s2502_s8, 0 }
   0xd   : > { %p46_p3 = scmp.ne.s32.totalorder %s2494_s29, %s2490_s28  ;;  %p3429_p4 = scmp.eq.s32.totalorder %s2584_s2, 0 }
   0xe   : > { %s2600_s12 = scalar_select %p31_p1, %s2498_s30, %s33_s10  }
   0xf   : > { %p2602_p5 = por %p41_p2, %p40_p0  ;;  %p2608_p6 = por %p3429_p4, %p46_p3 }
  0x10   : > { %3432 = sst [smem:[#allocation14_spill]] %s2600_s12  ;;  %p196_p7 = scmp.eq.s32.totalorder %s2584_s2, 1 }
  0x11   : > { %s3433_s13 = scalar_select %p2602_p5, 1, 0 }
  0x12   : > { %s3434_s14 = scalar_select %p2608_p6, 1, 0 }
  0x13   : > { %p202_p8 = scmp.eq.s32.totalorder %s2146_s5, 1  ;;  %p2147_p9 = scmp.ge.s32.totalorder %s2502_s8, 1 }
  0x14   : > { %p209_p10 = scmp.lt.s32.totalorder %s2502_s8, 3  ;;  %p2615_p11 = por %p196_p7, %p40_p0 }
  0x15   : > { %p2619_p12 = por %p202_p8, %p46_p3  ;;  %s2504_s18 = smov [#allocation7]  }
  0x16   : > { %s3435_s15 = scalar_select %p2615_p11, 1, 0 }
  0x17   : > { %s3436_s16 = scalar_select %p2619_p12, 1, 0 }
  0x18   : > { %p2623_p13 = pnand %p2147_p9, %p209_p10  ;;  %s221_s19 = sshll.u32 %s2504_s18, 4  ;;  %s222_s19 = int_to_ptr.vmem [resolvable:$true] %s221_s19 }
  0x19   : > { %s2505_s21 = smov [#allocation9]   ;;  %s2348_s25 = scalar_lea.hbm %s3422_s1, 2048 }
  0x1a   : > { %s3437_s17 = scalar_select %p2623_p13, 1, 0 }
  0x1b   : > { %p2249_p1 = pneg %p2623_p13  ;;  %s240_s22 = sshll.u32 %s2505_s21, 4  ;;  %s2635_s22 = int_to_ptr.vmem [resolvable:$true] %s240_s22 }
  0x1c   : > { %p2349_p0 = scmp.ne.s32.totalorder %s3422_s1, %s2348_s25  ;;  %p2355_p9 = scmp.lt.u32.totalorder %s2348_s25, %s3422_s1 }
  0x1d   : > { %p2631_p2 = pnand %p2249_p1, %p3429_p4 }
  0x1f   : > { %p2350_p3 = pneg %p2631_p2 }
  0x21   : > { %p2351_p7 = pnand %p2350_p3, %p2349_p0 }
  0x23   : > { %p2352_p8 = pneg %p2351_p7 }
  0x25   : > { %p2357_p10 = pnand %p2355_p9, %p2352_p8 }
  0x27   : > { %2360 = shalt.err (!%p2357_p10)
}
  0x28   : > { %s2361_s11 = scalar_lea.vmem %s222_s19, 2048  ;;  %p2369_p11 = scmp.lt.s32.totalorder %s222_s19, %s222_s19 }
  0x29   : > { %p2362_p1 = scmp.ne.s32.totalorder %s222_s19, %s2361_s11  ;;  %p2370_p6 = scmp.lt.s32.totalorder %s2361_s11, %s2361_s11 }
  0x2b   : > { %p2364_p4 = pnand %p2362_p1, %p2350_p3  ;;  %p2371_p13 = por %p2370_p6, %p2369_p11 }
  0x2d   : > { %p2365_p12 = pneg %p2364_p4 }
  0x2f   : > { %p2372_p5 = pnand %p2371_p13, %p2365_p12 }
  0x31   : > { %2375 = shalt.err (!%p2372_p5)
}
  0x32   : > { %s2506_s18 = smov 128   ;;  %s2507_s21 = smov 8  }
  0x33   : > { %2252 = dma.hbm_to_vmem [thread:$0]  (!%p2631_p2), %s3422_s1, 2048, %s222_s19, [#allocation8], %s2506_s18, %s2506_s18, %s2507_s21  }
  0x34   : > { %s2376_s27 = scalar_lea.hbm %s3425_s4, 2048 }
  0x35   : > { %p2377_p4 = scmp.ne.s32.totalorder %s3425_s4, %s2376_s27  ;;  %p2383_p11 = scmp.lt.u32.totalorder %s2376_s27, %s3425_s4 }
  0x37   : > { %p2379_p5 = pnand %p2377_p4, %p2350_p3 }
  0x39   : > { %p2380_p6 = pneg %p2379_p5 }
  0x3b   : > { %p2385_p12 = pnand %p2383_p11, %p2380_p6 }
  0x3d   : > { %2388 = shalt.err (!%p2385_p12)
}
  0x3e   : > { %s2389_s19 = scalar_lea.vmem %s2635_s22, 2048  ;;  %p2397_p8 = scmp.lt.s32.totalorder %s2635_s22, %s2635_s22 }
  0x3f   : > { %p2390_p13 = scmp.ne.s32.totalorder %s2635_s22, %s2389_s19  ;;  %p2398_p9 = scmp.lt.s32.totalorder %s2389_s19, %s2389_s19 }
  0x41   : > { %p2392_p0 = pnand %p2390_p13, %p2350_p3  ;;  %p2399_p10 = por %p2398_p9, %p2397_p8 }
  0x43   : > { %p2393_p7 = pneg %p2392_p0 }
  0x45   : > { %p2400_p1 = pnand %p2399_p10, %p2393_p7 }
  0x47   : > { %2403 = shalt.err (!%p2400_p1)
}
  0x48   : > { %s2508_s12 = smov 64   ;;  %s2509_s18 = smov 4  }
  0x49   : > { %2255 = dma.hbm_to_vmem [thread:$0]  (!%p2631_p2), %s3425_s4, 2048, %s2635_s22, [#allocation8], %s2508_s12, %s2508_s12, %s2509_s18  }
  0x4a   : > { %p2150_p4 = scmp.ge.s32.totalorder %s2502_s8, 2 }
  0x4b   : > { %p3439_p3 = scmp.ne.s32.totalorder (!%p2150_p4), %s3433_s13, 0 }
  0x4c   : > { %256 = sbr.rel (%p2150_p4) target bundleno = 118 (0x76), region = 40 }
  0x53   : > { %259 = sbr.rel (!%p3439_p3) target bundleno = 118 (0x76), region = 44  ;;  %s260_s24 = sand.u32 (%p3439_p3), 1, %s2498_s30  }
  0x54   : > { %s2152_s25 = sshll.u32 (%p3439_p3), %s2502_s8, 6  ;;  %s2151_s26 = sshll.u32 (%p3439_p3), %s260_s24, 9 }
  0x55   : > { %s266_s27 = ssub.s32 (%p3439_p3), 125, %s2152_s25  ;;  %s2694_s5 = scalar_lea.sflag (%p3439_p3), [#allocation5], %s260_s24 }
  0x56   : > { %p267_p5 = scmp.lt.s32.totalorder (%p3439_p3), %s266_s27, 64  ;;  %s264_s10 = scalar_lea.vmem (%p3439_p3), [#allocation4], %s2151_s26 }
  0x5a   : > { %s3452_s27 = smov (!%p267_p5, %s266_s27), 64 }
  0x5b   : > { %s2691_s20 = sshll.u32 %s3452_s27, 7 }
  0x5c   : > { %s271_s22 = ssub.s32 8192, %s2691_s20 }
  0x5d   : > { %272 = vsyncadd %s2694_s5, %s271_s22  ;;  %p2154_p2 = scmp.ne.s32.totalorder %s2691_s20, 0  ;;  %s2205_s13 = sshll.u32 %s2502_s8, 13 }
  0x5e   : > { %s2702_s12 = scalar_lea.hbm %s3421_s0, %s2205_s13  ;;  %s277_s18 = sshll.u32 %s264_s10, 4  ;;  %s2704_s18 = int_to_ptr.vmem [resolvable:$true] %s277_s18 }
  0x5f   : > { %s2404_s21 = scalar_lea.hbm %s2702_s12, %s2691_s20  ;;  %s2408_s25 = scalar_lea.hbm %s3421_s0, 16000 }
  0x60   : > { %p2405_p6 = scmp.ne.s32.totalorder %s2702_s12, %s2404_s21  ;;  %p2409_p13 = scmp.lt.u32.totalorder %s2702_s12, %s3421_s0 }
  0x61   : > { %p2410_p0 = scmp.lt.u32.totalorder %s2408_s25, %s2404_s21  ;;  %p2412_p8 = scmp.lt.u32.totalorder %s2404_s21, %s2702_s12 }
  0x62   : > { %p2406_p11 = pnand %p2405_p6, %p2154_p2 }
  0x63   : > { %p2411_p7 = por %p2410_p0, %p2409_p13 }
  0x64   : > { %p2407_p12 = pneg %p2406_p11 }
  0x65   : > { %p2413_p9 = por %p2412_p8, %p2411_p7 }
  0x67   : > { %p2414_p10 = pnand %p2413_p9, %p2407_p12 }
  0x69   : > { %2417 = shalt.err (!%p2414_p10)
}
  0x6a   : > { %s2418_s22 = scalar_lea.vmem %s2704_s18, %s2691_s20  ;;  %s2510_s10 = smov [#allocation4]  }
  0x6b   : > { %p2419_p1 = scmp.ne.s32.totalorder %s2704_s18, %s2418_s22  ;;  %s2422_s13 = sshll.u32 %s2510_s10, 4  ;;  %s2423_s13 = int_to_ptr.vmem [resolvable:$false] %s2422_s13 }
  0x6c   : > { %s2424_s11 = scalar_lea.vmem %s2423_s13, 16384  ;;  %p2425_p6 = scmp.lt.s32.totalorder %s2704_s18, %s2423_s13 }
  0x6d   : > { %p2420_p3 = pnand %p2419_p1, %p2154_p2  ;;  %p2426_p11 = scmp.lt.s32.totalorder %s2424_s11, %s2418_s22 }
  0x6f   : > { %p2421_p5 = pneg %p2420_p3  ;;  %p2427_p13 = por %p2426_p11, %p2425_p6 }
  0x71   : > { %p2428_p0 = pnand %p2427_p13, %p2421_p5 }
  0x73   : > { %2431 = shalt.err (!%p2428_p0)
}
  0x74   : > { %s2511_s19 = smov 128   ;;  %s2512_s21 = smov 8  }
  0x75   : > { %283 = dma.hbm_to_vmem [thread:$0]  (%p2154_p2), %s2702_s12, %s2691_s20, %s2704_s18, %s2694_s5, %s2511_s19, %s2511_s19, %s2512_s21  }
  0x76 PF: > { %p3440_p12 = scmp.ne.s32.totalorder %s3437_s17, 0 }
  0x77   : > { %s2734_s23 = sand.u32 (!%p3440_p12), 1, %s2494_s29   ;;  %p3441_p7 = scmp.ne.s32.totalorder (!%p3440_p12), %s3434_s14, 0 }
  0x78   : > { %289 = sbr.rel (%p3440_p12) target bundleno = 886 (0x376), region = 48  ;;  %s2159_s24 = sshll.u32 (!%p3440_p12), %s2734_s23, 9 }
  0x79   : > { %s292_s25 = scalar_lea.sflag (!%p3440_p12), [#allocation5], %s2734_s23  ;;  %s2740_s26 = scalar_lea.vmem (!%p3440_p12), [#allocation4], %s2159_s24 }
  0x7f   : > { %2477 = dma.done.wait (%p3441_p7), %s292_s25, 8192  }
  0x80   : > { %2479 = vsyncadd (%p3441_p7), %s292_s25, 4294959104  ;;  %p3442_p2 = scmp.eq.s32.totalorder %s2584_s2, 0 }
  0x82   : > { %2481 = dma.done.wait (%p3442_p2), [#allocation8], 4096   ;;  %p3443_p8 = pmov %p3442_p2 }
  0x83   : > { %v2513_v0 = vmov 0   ;;  %v2308_v1 = vld [vmem:[#allocation7 + $0x4] ss:$8 sps:$4 sm:$0xff]   ;;  %v2310_v2 = vld [vmem:[#allocation7] ss:$8 sps:$4 sm:$0xff]   ;;  %v347_v20 = vld [vmem:[%s2740_s26 + $0x10] sm:$0xff] }
  0x84   : > { %2483 = vsyncadd (%p3443_p8), [#allocation8], 4294963200  ;;  %569 = vmatprep.mubr.bf16.mxu0 %v2513_v0  ;;  %2207 = vmatprep.subr.bf16.mxu1 %v2513_v0  ;;  %v2311_v3 = vld [vmem:[#allocation7 + $0x14] ss:$8 sps:$4 sm:$0xff]   ;;  %v2313_v4 = vld [vmem:[#allocation7 + $0x10] ss:$8 sps:$4 sm:$0xff]  }
  0x85   : > { %537 = vmatprep.subr.bf16.mxu0 %v2308_v1  ;;  %v2314_v5 = vld [vmem:[#allocation7 + $0x24] ss:$8 sps:$4 sm:$0xff]   ;;  %v2316_v6 = vld [vmem:[#allocation7 + $0x20] ss:$8 sps:$4 sm:$0xff]   ;;  %v2317_v7 = vld [vmem:[#allocation7 + $0x34] ss:$8 sps:$4 sm:$0xff]  }
  0x86   : > { %538 = vmatpush1.bf16.msra.mxu0 %v2310_v2  ;;  %v2319_v8 = vld [vmem:[#allocation7 + $0x30] ss:$8 sps:$4 sm:$0xff]   ;;  %v2320_v9 = vld [vmem:[#allocation7 + $0x44] ss:$8 sps:$4 sm:$0xff]   ;;  %v2322_v10 = vld [vmem:[#allocation7 + $0x40] ss:$8 sps:$4 sm:$0xff]  }
  0x87   : > { %539 = vmatprep.subr.bf16.mxu0 %v2311_v3  ;;  %v2323_v11 = vld [vmem:[#allocation7 + $0x54] ss:$8 sps:$4 sm:$0xff]   ;;  %v2325_v12 = vld [vmem:[#allocation7 + $0x50] ss:$8 sps:$4 sm:$0xff]   ;;  %v2326_v13 = vld [vmem:[#allocation7 + $0x64] ss:$8 sps:$4 sm:$0xff]  }
  0x88   : > { %v2328_v14 = vld [vmem:[#allocation7 + $0x60] ss:$8 sps:$4 sm:$0xff]   ;;  %v2329_v15 = vld [vmem:[#allocation7 + $0x74] ss:$8 sps:$4 sm:$0xff]   ;;  %v2331_v16 = vld [vmem:[#allocation7 + $0x70] ss:$8 sps:$4 sm:$0xff]  }
  0x89   : > { %v345_v17 = vld [vmem:[%s2740_s26] sm:$0xff]  ;;  %v346_v18 = vld [vmem:[%s2740_s26 + $0x8] sm:$0xff]  ;;  %v348_v21 = vld [vmem:[%s2740_s26 + $0x18] sm:$0xff]  ;;  %s890_s14 = sld [smem:[#allocation2]]  ;;  %s3160_s27 = scalar_lea.vmem [#allocation10], %s2159_s24 }
  0x8a   : > { %540 = vmatpush1.bf16.msra.mxu0 %v2313_v4  ;;  %v409_v19 = vpack.c.bf16 %v346_v18, %v345_v17  ;;  %v410_v22 = vpack.c.bf16 %v348_v21, %v347_v20  ;;  %v349_v23 = vld [vmem:[%s2740_s26 + $0x20] sm:$0xff]  ;;  %v350_v24 = vld [vmem:[%s2740_s26 + $0x28] sm:$0xff]  ;;  %v351_v26 = vld [vmem:[%s2740_s26 + $0x30] sm:$0xff]  ;;  %s1769_s5 = sld [smem:[#allocation3]]  ;;  %s2035_s22 = scalar_lea.sflag [#allocation6], %s2734_s23 }
  0x8b   : > { %541 = vmatprep.subr.bf16.mxu0 %v2314_v5  ;;  %v411_v25 = vpack.c.bf16 %v350_v24, %v349_v23  ;;  %v352_v27 = vld [vmem:[%s2740_s26 + $0x38] sm:$0xff]  ;;  %v353_v29 = vld [vmem:[%s2740_s26 + $0x40] sm:$0xff]  ;;  %v354_v30 = vld [vmem:[%s2740_s26 + $0x48] sm:$0xff]  ;;  %p3444_p9 = scmp.ne.s32.totalorder %s3435_s15, 0 }
  0x8c   : > { %v412_v28 = vpack.c.bf16 %v352_v27, %v351_v26  ;;  %v413_v31 = vpack.c.bf16 %v354_v30, %v353_v29  ;;  %v355_v32 = vld [vmem:[%s2740_s26 + $0x50] sm:$0xff]  ;;  %v356_v33 = vld [vmem:[%s2740_s26 + $0x58] sm:$0xff]  ;;  %v357_v35 = vld [vmem:[%s2740_s26 + $0x60] sm:$0xff]  ;;  %s2197_s10 = sshll.u32 (%p3444_p9), %s2584_s2, 6 }
  0x8d   : > { %v414_v34 = vpack.c.bf16 %v356_v33, %v355_v32  ;;  %v358_v36 = vld [vmem:[%s2740_s26 + $0x68] sm:$0xff]  ;;  %v2332_v38 = vld [vmem:[#allocation9] sm:$0xff]   ;;  %v359_v39 = vld [vmem:[%s2740_s26 + $0x70] sm:$0xff]  ;;  %s2043_s13 = ssub.s32 (%p3444_p9), 125, %s2197_s10 }
  0x8e   : > { %542 = vmatpush1.bf16.msra.mxu0 %v2316_v6  ;;  %v415_v37 = vpack.c.bf16 %v358_v36, %v357_v35  ;;  %v360_v40 = vld [vmem:[%s2740_s26 + $0x78] sm:$0xff]  ;;  %2223 = vmatpush1.bf16.msra.mxu1 %v2332_v38  ;;  %v2333_v41 = vld [vmem:[#allocation9 + $0x8] sm:$0xff]   ;;  %v2334_v43 = vld [vmem:[#allocation9 + $0x10] sm:$0xff]   ;;  %p2044_p10 = scmp.lt.s32.totalorder (%p3444_p9), %s2043_s13, 64 }
  0x8f   : > { %543 = vmatprep.subr.bf16.mxu0 %v2317_v7  ;;  %2208 = vmatprep.subr.bf16.mxu1 %v2513_v0  ;;  %v416_v42 = vpack.c.bf16 %v360_v40, %v359_v39  ;;  %v361_v44 = vld [vmem:[%s2740_s26 + $0x80] sm:$0xff]  ;;  %v362_v45 = vld [vmem:[%s2740_s26 + $0x88] sm:$0xff]  ;;  %v2335_v46 = vld [vmem:[#allocation9 + $0x18] sm:$0xff]  }
  0x90   : > { %v417_v47 = vpack.c.bf16 %v362_v45, %v361_v44  ;;  %v2336_v48 = vld [vmem:[#allocation9 + $0x20] sm:$0xff]   ;;  %v363_v49 = vld [vmem:[%s2740_s26 + $0x90] sm:$0xff]  ;;  %v364_v50 = vld [vmem:[%s2740_s26 + $0x98] sm:$0xff] }
  0x91   : > { %v2337_v51 = vld [vmem:[#allocation9 + $0x28] sm:$0xff]   ;;  %v418_v52 = vpack.c.bf16 %v364_v50, %v363_v49  ;;  %v2338_v53 = vld [vmem:[#allocation9 + $0x30] sm:$0xff]   ;;  %v365_v54 = vld [vmem:[%s2740_s26 + $0xa0] sm:$0xff] }
  0x92   : > { %544 = vmatpush1.bf16.msra.mxu0 %v2319_v8  ;;  %2224 = vmatpush1.bf16.msra.mxu1 %v2333_v41  ;;  %v366_v55 = vld [vmem:[%s2740_s26 + $0xa8] sm:$0xff]  ;;  %v2339_v56 = vld [vmem:[#allocation9 + $0x38] sm:$0xff]   ;;  %v2340_v58 = vld [vmem:[#allocation9 + $0x40] sm:$0xff]  }
  0x93   : > { %545 = vmatprep.subr.bf16.mxu0 %v2320_v9  ;;  %2209 = vmatprep.subr.bf16.mxu1 %v2513_v0  ;;  %v419_v57 = vpack.c.bf16 %v366_v55, %v365_v54  ;;  %v367_v59 = vld [vmem:[%s2740_s26 + $0xb0] sm:$0xff]  ;;  %v368_v60 = vld [vmem:[%s2740_s26 + $0xb8] sm:$0xff]  ;;  %v2341_v61 = vld [vmem:[#allocation9 + $0x48] sm:$0xff]  }
  0x94   : > { %v420_v62 = vpack.c.bf16 %v368_v60, %v367_v59  ;;  %v2342_v63 = vld [vmem:[#allocation9 + $0x50] sm:$0xff]   ;;  %v369_v1 = vld [vmem:[%s2740_s26 + $0xc0] sm:$0xff]  ;;  %v370_v2 = vld [vmem:[%s2740_s26 + $0xc8] sm:$0xff] }
  0x95   : > { %v2343_v3 = vld [vmem:[#allocation9 + $0x58] sm:$0xff]   ;;  %v421_v4 = vpack.c.bf16 %v370_v2, %v369_v1  ;;  %v2344_v5 = vld [vmem:[#allocation9 + $0x60] sm:$0xff]   ;;  %v371_v6 = vld [vmem:[%s2740_s26 + $0xd0] sm:$0xff] }
  0x96   : > { %546 = vmatpush1.bf16.msra.mxu0 %v2322_v10  ;;  %2225 = vmatpush1.bf16.msra.mxu1 %v2334_v43  ;;  %v372_v7 = vld [vmem:[%s2740_s26 + $0xd8] sm:$0xff]  ;;  %v2345_v8 = vld [vmem:[#allocation9 + $0x68] sm:$0xff]   ;;  %v2346_v10 = vld [vmem:[#allocation9 + $0x70] sm:$0xff]  }
  0x97   : > { %547 = vmatprep.subr.bf16.mxu0 %v2323_v11  ;;  %2210 = vmatprep.subr.bf16.mxu1 %v2513_v0  ;;  %v422_v9 = vpack.c.bf16 %v372_v7, %v371_v6  ;;  %v373_v11 = vld [vmem:[%s2740_s26 + $0xe0] sm:$0xff]  ;;  %v379_v21 = vld [vmem:[%s2740_s26 + $0x110] sm:$0xff]  ;;  %v392_v40 = vld [vmem:[%s2740_s26 + $0x178] sm:$0xff] }
  0x98   : > { %v377_v18 = vld [vmem:[%s2740_s26 + $0x100] sm:$0xff]  ;;  %v383_v27 = vld [vmem:[%s2740_s26 + $0x130] sm:$0xff]  ;;  %v398_v50 = vld [vmem:[%s2740_s26 + $0x1a8] sm:$0xff] }
  0x99   : > { %v381_v24 = vld [vmem:[%s2740_s26 + $0x120] sm:$0xff]  ;;  %v387_v33 = vld [vmem:[%s2740_s26 + $0x150] sm:$0xff] }
  0x9a   : > { %548 = vmatpush1.bf16.msra.mxu0 %v2325_v12  ;;  %2226 = vmatpush1.bf16.msra.mxu1 %v2335_v46  ;;  %v374_v12 = vld [vmem:[%s2740_s26 + $0xe8] sm:$0xff]  ;;  %v385_v30 = vld [vmem:[%s2740_s26 + $0x140] sm:$0xff]  ;;  %v391_v39 = vld [vmem:[%s2740_s26 + $0x170] sm:$0xff] }
  0x9b   : > { %549 = vmatprep.subr.bf16.mxu0 %v2326_v13  ;;  %2211 = vmatprep.subr.bf16.mxu1 %v2513_v0  ;;  %v2347_v13 = vld [vmem:[#allocation9 + $0x78] sm:$0xff]   ;;  %v389_v36 = vld [vmem:[%s2740_s26 + $0x160] sm:$0xff]  ;;  %v395_v45 = vld [vmem:[%s2740_s26 + $0x190] sm:$0xff] }
  0x9c   : > { %v397_v49 = vld [vmem:[%s2740_s26 + $0x1a0] sm:$0xff] }
  0x9d   : > { %v1020_v54 = vld [vmem:[%s3424_s3] sm:$0x3] }
  0x9e   : > { %550 = vmatpush1.bf16.msra.mxu0 %v2328_v14  ;;  %2227 = vmatpush1.bf16.msra.mxu1 %v2336_v48  ;;  %v423_v14 = vpack.c.bf16 %v374_v12, %v373_v11  ;;  %v401_v11 = vld [vmem:[%s2740_s26 + $0x1c0] sm:$0xff]  ;;  %v402_v12 = vld [vmem:[%s2740_s26 + $0x1c8] sm:$0xff] }
  0x9f   : > { %551 = vmatprep.subr.bf16.mxu0 %v2329_v15  ;;  %2212 = vmatprep.subr.bf16.mxu1 %v2513_v0  ;;  %v375_v15 = vld [vmem:[%s2740_s26 + $0xf0] sm:$0xff] }
  0xa2   : > { %552 = vmatpush1.bf16.msra.mxu0 %v2331_v16  ;;  %2228 = vmatpush1.bf16.msra.mxu1 %v2337_v51  ;;  %v376_v16 = vld [vmem:[%s2740_s26 + $0xf8] sm:$0xff] }
  0xa3   : > { %1480 = vmatprep.subr.bf16.mxu0 %v2513_v0  ;;  %2213 = vmatprep.subr.bf16.mxu1 %v2513_v0  ;;  %v424_v17 = vpack.c.bf16 %v376_v16, %v375_v15 }
  0xa5   : > { %570 = vmatmul.mubr.bf16.vlgmr.msra.gmra.mrb[0].mxu0 %v409_v19  ;;  %v378_v19 = vld [vmem:[%s2740_s26 + $0x108] sm:$0xff] }
  0xa6   : > { %579 = vmatprep.mubr.bf16.mxu0 %v2513_v0  ;;  %1481 = vmatpush1.bf16.msra.mxu0 %v2332_v38  ;;  %v425_v20 = vpack.c.bf16 %v378_v19, %v377_v18 }
  0xa7   : > { %1482 = vmatprep.subr.bf16.mxu0 %v2513_v0  ;;  %2229 = vmatpush1.bf16.msra.mxu1 %v2338_v53 }
  0xa8   : > { %2214 = vmatprep.subr.bf16.mxu1 %v2513_v0 }
  0xaa   : > { %1483 = vmatpush1.bf16.msra.mxu0 %v2333_v41  ;;  %v432_v41 = vpack.c.bf16 %v392_v40, %v391_v39 }
  0xab   : > { %1484 = vmatprep.subr.bf16.mxu0 %v2513_v0  ;;  %2230 = vmatpush1.bf16.msra.mxu1 %v2339_v56 }
  0xac   : > { %2215 = vmatprep.subr.bf16.mxu1 %v2513_v0 }
  0xad   : > { %580 = vmatmul.mubr.bf16.gmra.mrb[4].mxu0 %v410_v22  ;;  %v380_v22 = vld [vmem:[%s2740_s26 + $0x118] sm:$0xff] }
  0xae   : > { %589 = vmatprep.mubr.bf16.mxu0 %v2513_v0  ;;  %1485 = vmatpush1.bf16.msra.mxu0 %v2334_v43  ;;  %v426_v23 = vpack.c.bf16 %v380_v22, %v379_v21  ;;  %v394_v43 = vld [vmem:[%s2740_s26 + $0x188] sm:$0xff]  ;;  %v437_v21 = vpack.c.bf16 %v402_v12, %v401_v11 }
  0xaf   : > { %1486 = vmatprep.subr.bf16.mxu0 %v2513_v0  ;;  %2231 = vmatpush1.bf16.msra.mxu1 %v2340_v58 }
  0xb0   : > { %2216 = vmatprep.subr.bf16.mxu1 %v2513_v0 }
  0xb2   : > { %1487 = vmatpush1.bf16.msra.mxu0 %v2335_v46  ;;  %v396_v46 = vld [vmem:[%s2740_s26 + $0x198] sm:$0xff] }
  0xb3   : > { %1488 = vmatprep.subr.bf16.mxu0 %v2513_v0  ;;  %2232 = vmatpush1.bf16.msra.mxu1 %v2341_v61 }
  0xb4   : > { %2217 = vmatprep.subr.bf16.mxu1 %v2513_v0 }
  0xb5   : > { %590 = vmatmul.mubr.bf16.gmra.mrb[8].mxu0 %v411_v25  ;;  %v382_v25 = vld [vmem:[%s2740_s26 + $0x128] sm:$0xff] }
  0xb6   : > { %599 = vmatprep.mubr.bf16.mxu0 %v2513_v0  ;;  %1489 = vmatpush1.bf16.msra.mxu0 %v2336_v48  ;;  %v427_v26 = vpack.c.bf16 %v382_v25, %v381_v24  ;;  %v1022_v48 = vlaneseq }
  0xb7   : > { %1490 = vmatprep.subr.bf16.mxu0 %v2513_v0  ;;  %2233 = vmatpush1.bf16.msra.mxu1 %v2342_v63 }
  0xb8   : > { %2218 = vmatprep.subr.bf16.mxu1 %v2513_v0 }
  0xba   : > { %1491 = vmatpush1.bf16.msra.mxu0 %v2337_v51  ;;  %v1023_v51 = vshrl.u32 %v1022_v48, 7 }
  0xbb   : > { %1492 = vmatprep.subr.bf16.mxu0 %v2513_v0  ;;  %2234 = vmatpush1.bf16.msra.mxu1 %v2343_v3 }
  0xbc   : > { %2219 = vmatprep.subr.bf16.mxu1 %v2513_v0  ;;  %v1028_v55 = vsub.s32 1, %v1023_v51 }
  0xbd   : > { %600 = vmatmul.mubr.bf16.gmra.mrb[12].mxu0 %v412_v28  ;;  %v384_v28 = vld [vmem:[%s2740_s26 + $0x138] sm:$0xff] }
  0xbe   : > { %609 = vmatprep.mubr.bf16.mxu0 %v2513_v0  ;;  %1493 = vmatpush1.bf16.msra.mxu0 %v2338_v53  ;;  %v428_v29 = vpack.c.bf16 %v384_v28, %v383_v27  ;;  %v1024_v53 = vsub.s32 0, %v1023_v51 }
  0xbf   : > { %1494 = vmatprep.subr.bf16.mxu0 %v2513_v0  ;;  %2235 = vmatpush1.bf16.msra.mxu1 %v2344_v5 }
  0xc0   : > { %2220 = vmatprep.subr.bf16.mxu1 %v2513_v0  ;;  %v2871_v59 = vrot.slane %v1020_v54, %v1024_v53  ;;  %v405_v53 = vld [vmem:[%s2740_s26 + $0x1e0] sm:$0xff] }
  0xc2   : > { %1495 = vmatpush1.bf16.msra.mxu0 %v2339_v56  ;;  %v2866_v56 = vstv %s890_s14 }
  0xc3   : > { %1496 = vmatprep.subr.bf16.mxu0 %v2513_v0  ;;  %2236 = vmatpush1.bf16.msra.mxu1 %v2345_v8 }
  0xc4   : > { %2221 = vmatprep.subr.bf16.mxu1 %v2513_v0 }
  0xc5   : > { %610 = vmatmul.mubr.bf16.gmra.mrb[16].mxu0 %v413_v31  ;;  %v386_v31 = vld [vmem:[%s2740_s26 + $0x148] sm:$0xff] }
  0xc6   : > { %619 = vmatprep.mubr.bf16.mxu0 %v2513_v0  ;;  %1497 = vmatpush1.bf16.msra.mxu0 %v2340_v58  ;;  %v429_v32 = vpack.c.bf16 %v386_v31, %v385_v30  ;;  %v400_v58 = vld [vmem:[%s2740_s26 + $0x1b8] sm:$0xff] }
  0xc7   : > { %1498 = vmatprep.subr.bf16.mxu0 %v2513_v0  ;;  %2237 = vmatpush1.bf16.msra.mxu1 %v2346_v10 }
  0xc8   : > { %2222 = vmatprep.subr.bf16.mxu1 %v2513_v0 }
  0xca   : > { %1499 = vmatpush1.bf16.msra.mxu0 %v2341_v61  ;;  %v2873_v61 = vrot.slane %v1020_v54, %v1028_v55  ;;  %v406_v54 = vld [vmem:[%s2740_s26 + $0x1e8] sm:$0xff] }
  0xcb   : > { %1500 = vmatprep.subr.bf16.mxu0 %v2513_v0  ;;  %2238 = vmatpush1.bf16.msra.mxu1 %v2347_v13 }
  0xcd   : > { %620 = vmatmul.mubr.bf16.gmra.mrb[20].mxu0 %v414_v34  ;;  %v388_v34 = vld [vmem:[%s2740_s26 + $0x158] sm:$0xff] }
  0xce   : > { %629 = vmatprep.mubr.bf16.mxu0 %v2513_v0  ;;  %1501 = vmatpush1.bf16.msra.mxu0 %v2342_v63  ;;  %v430_v35 = vpack.c.bf16 %v388_v34, %v387_v33  ;;  %v404_v33 = vld [vmem:[%s2740_s26 + $0x1d8] sm:$0xff] }
  0xcf   : > { %1502 = vmatprep.subr.bf16.mxu0 %v2513_v0 }
  0xd2   : > { %1503 = vmatpush1.bf16.msra.mxu0 %v2343_v3 }
  0xd3   : > { %1504 = vmatprep.subr.bf16.mxu0 %v2513_v0 }
  0xd5   : > { %630 = vmatmul.mubr.bf16.gmra.mrb[24].mxu0 %v415_v37  ;;  %v390_v37 = vld [vmem:[%s2740_s26 + $0x168] sm:$0xff] }
  0xd6   : > { %639 = vmatprep.mubr.bf16.mxu0 %v2513_v0  ;;  %1505 = vmatpush1.bf16.msra.mxu0 %v2344_v5  ;;  %v431_v38 = vpack.c.bf16 %v390_v37, %v389_v36 }
  0xd7   : > { %1506 = vmatprep.subr.bf16.mxu0 %v2513_v0 }
  0xda   : > { %1507 = vmatpush1.bf16.msra.mxu0 %v2345_v8 }
  0xdb   : > { %1508 = vmatprep.subr.bf16.mxu0 %v2513_v0 }
  0xdd   : > { %640 = vmatmul.mubr.bf16.gmra.mrb[28].mxu0 %v416_v42  ;;  %v393_v42 = vld [vmem:[%s2740_s26 + $0x180] sm:$0xff] }
  0xde   : > { %649 = vmatprep.mubr.bf16.mxu0 %v2513_v0  ;;  %1509 = vmatpush1.bf16.msra.mxu0 %v2346_v10  ;;  %v433_v44 = vpack.c.bf16 %v394_v43, %v393_v42 }
  0xdf   : > { %1510 = vmatprep.subr.bf16.mxu0 %v2513_v0 }
  0xe2   : > { %1511 = vmatpush1.bf16.msra.mxu0 %v2347_v13 }
  0xe5   : > { %650 = vmatmul.mubr.bf16.gmra.mrb[32].mxu0 %v417_v47  ;;  %v434_v47 = vpack.c.bf16 %v396_v46, %v395_v45 }
  0xe6   : > { %659 = vmatprep.mubr.bf16.mxu0 %v2513_v0 }
  0xed   : > { %660 = vmatmul.mubr.bf16.gmra.mrb[36].mxu0 %v418_v52  ;;  %v435_v52 = vpack.c.bf16 %v398_v50, %v397_v49 }
  0xee   : > { %669 = vmatprep.mubr.bf16.mxu0 %v2513_v0 }
  0xf5   : > { %670 = vmatmul.mubr.bf16.gmra.mrb[40].mxu0 %v419_v57  ;;  %v399_v57 = vld [vmem:[%s2740_s26 + $0x1b0] sm:$0xff] }
  0xf6   : > { %679 = vmatprep.mubr.bf16.mxu0 %v2513_v0  ;;  %v436_v1 = vpack.c.bf16 %v400_v58, %v399_v57 }
  0xfd   : > { %680 = vmatmul.mubr.bf16.gmra.mrb[44].mxu0 %v420_v62 }
  0xfe   : > { %689 = vmatprep.mubr.bf16.mxu0 %v2513_v0 }
 0x105   : > { %690 = vmatmul.mubr.bf16.gmra.mrb[48].mxu0 %v421_v4 }
 0x106   : > { %699 = vmatprep.mubr.bf16.mxu0 %v2513_v0 }
 0x10d   : > { %700 = vmatmul.mubr.bf16.gmra.mrb[52].mxu0 %v422_v9 }
 0x10e   : > { %709 = vmatprep.mubr.bf16.mxu0 %v2513_v0 }
 0x115   : > { %710 = vmatmul.mubr.bf16.gmra.mrb[56].mxu0 %v423_v14 }
 0x116   : > { %719 = vmatprep.mubr.bf16.mxu0 %v2513_v0 }
 0x11d   : > { %720 = vmatmul.mubr.bf16.gmra.mrb[60].mxu0 %v424_v17 }
 0x11e   : > { %729 = vmatprep.mubr.bf16.mxu0 %v2513_v0 }
 0x125   : > { %730 = vmatmul.mubr.bf16.gmra.mrb[64].mxu0 %v425_v20 }
 0x126   : > { %739 = vmatprep.mubr.bf16.mxu0 %v2513_v0 }
 0x12d   : > { %740 = vmatmul.mubr.bf16.gmra.mrb[68].mxu0 %v426_v23 }
 0x12e   : > { %749 = vmatprep.mubr.bf16.mxu0 %v2513_v0 }
 0x135   : > { %750 = vmatmul.mubr.bf16.gmra.mrb[72].mxu0 %v427_v26 }
 0x136   : > { %759 = vmatprep.mubr.bf16.mxu0 %v2513_v0 }
 0x13d   : > { %760 = vmatmul.mubr.bf16.gmra.mrb[76].mxu0 %v428_v29 }
 0x13e   : > { %769 = vmatprep.mubr.bf16.mxu0 %v2513_v0 }
 0x145   : > { %770 = vmatmul.mubr.bf16.gmra.mrb[80].mxu0 %v429_v32  ;;  %v403_v32 = vld [vmem:[%s2740_s26 + $0x1d0] sm:$0xff] }
 0x146   : > { %779 = vmatprep.mubr.bf16.mxu0 %v2513_v0 }
 0x14d   : > { %780 = vmatmul.mubr.bf16.gmra.mrb[84].mxu0 %v430_v35 }
 0x14e   : > { %789 = vmatprep.mubr.bf16.mxu0 %v2513_v0 }
 0x155   : > { %790 = vmatmul.mubr.bf16.gmra.mrb[88].mxu0 %v431_v38 }
 0x156   : > { %799 = vmatprep.mubr.bf16.mxu0 %v2513_v0 }
 0x15d   : > { %800 = vmatmul.mubr.bf16.gmra.mrb[92].mxu0 %v432_v41  ;;  %v438_v41 = vpack.c.bf16 %v404_v33, %v403_v32 }
 0x15e   : > { %809 = vmatprep.mubr.bf16.mxu0 %v2513_v0 }
 0x165   : > { %810 = vmatmul.mubr.bf16.gmra.mrb[96].mxu0 %v433_v44 }
 0x166   : > { %819 = vmatprep.mubr.bf16.mxu0 %v2513_v0 }
 0x16d   : > { %820 = vmatmul.mubr.bf16.gmra.mrb[100].mxu0 %v434_v47 }
 0x16e   : > { %829 = vmatprep.mubr.bf16.mxu0 %v2513_v0 }
 0x175   : > { %830 = vmatmul.mubr.bf16.gmra.mrb[104].mxu0 %v435_v52 }
 0x176   : > { %839 = vmatprep.mubr.bf16.mxu0 %v2513_v0 }
 0x178   : > { %v571_v60 = vpop.f32.mrb[0].mxu0 }
 0x179   : > { %v892_v62 = vmul.f32 %v2866_v56, %v571_v60  ;;  %v573_v63 = vpop.f32.mrb[1].mxu0 }
 0x17a   : > { %v893_v2 = vmul.f32 %v2866_v56, %v573_v63  ;;  %v575_v3 = vpop.f32.mrb[2].mxu0 }
 0x17b   : > { %v1032_v4 = vadd.f32 %v2871_v59, %v892_v62  ;;  %v894_v5 = vmul.f32 %v2866_v56, %v575_v3  ;;  %v577_v6 = vpop.f32.mrb[3].mxu0 }
 0x17c   : > { %v1033_v7 = vadd.f32 %v2873_v61, %v893_v2  ;;  %v895_v8 = vmul.f32 %v2866_v56, %v577_v6  ;;  %v439_v2 = vpack.c.bf16 %v406_v54, %v405_v53 }
 0x17d   : > { %v1034_v9 = vadd.f32 %v2871_v59, %v894_v5  ;;  %840 = vmatmul.mubr.bf16.gmra.mrb[108].mxu0 %v436_v1  ;;  %v1160_v13 = vmax.f32 %v1032_v4, 0.0 }
 0x17e   : > { %v1035_v10 = vadd.f32 %v2873_v61, %v895_v8  ;;  %849 = vmatprep.mubr.bf16.mxu0 %v2513_v0  ;;  %v1161_v15 = vmax.f32 %v1033_v7, 0.0 }
 0x17f   : > { %v1162_v14 = vmax.f32 %v1034_v9, 0.0 }
 0x180   : > { %v1163_v16 = vmax.f32 %v1035_v10, 0.0  ;;  %v581_v17 = vpop.f32.mrb[4].mxu0 }
 0x181   : > { %v2886_v18 = vpack.c.bf16 %v1162_v14, %v1160_v13  ;;  %v896_v19 = vmul.f32 %v2866_v56, %v581_v17  ;;  %v583_v20 = vpop.f32.mrb[5].mxu0  ;;  %v407_v14 = vld [vmem:[%s2740_s26 + $0x1f0] sm:$0xff] }
 0x182   : > { %v897_v22 = vmul.f32 %v2866_v56, %v583_v20  ;;  %v585_v23 = vpop.f32.mrb[6].mxu0  ;;  %v2890_v24 = vpack.c.bf16 %v1163_v16, %v1161_v15  ;;  %v408_v15 = vld [vmem:[%s2740_s26 + $0x1f8] sm:$0xff] }
 0x183   : > { %v1036_v25 = vadd.f32 %v2871_v59, %v896_v19  ;;  %v898_v26 = vmul.f32 %v2866_v56, %v585_v23  ;;  %v587_v27 = vpop.f32.mrb[7].mxu0 }
 0x184   : > { %v1037_v28 = vadd.f32 %v2873_v61, %v897_v22  ;;  %v899_v29 = vmul.f32 %v2866_v56, %v587_v27 }
 0x185   : > { %v1038_v30 = vadd.f32 %v2871_v59, %v898_v26  ;;  %850 = vmatmul.mubr.bf16.gmra.mrb[112].mxu0 %v437_v21  ;;  %v1164_v34 = vmax.f32 %v1036_v25, 0.0  ;;  %v440_v25 = vpack.c.bf16 %v408_v15, %v407_v14 }
 0x186   : > { %v1039_v31 = vadd.f32 %v2873_v61, %v899_v29  ;;  %859 = vmatprep.mubr.bf16.mxu0 %v2513_v0  ;;  %v1165_v36 = vmax.f32 %v1037_v28, 0.0 }
 0x187   : > { %v1166_v35 = vmax.f32 %v1038_v30, 0.0 }
 0x188   : > { %v1167_v37 = vmax.f32 %v1039_v31, 0.0  ;;  %v591_v38 = vpop.f32.mrb[8].mxu0 }
 0x189   : > { %v900_v39 = vmul.f32 %v2866_v56, %v591_v38  ;;  %v593_v40 = vpop.f32.mrb[9].mxu0  ;;  %v2902_v42 = vpack.c.bf16 %v1166_v35, %v1164_v34 }
 0x18a   : > { %v901_v43 = vmul.f32 %v2866_v56, %v593_v40  ;;  %v595_v44 = vpop.f32.mrb[10].mxu0  ;;  %v2905_v45 = vpack.c.bf16 %v1167_v37, %v1165_v36 }
 0x18b   : > { %v1040_v46 = vadd.f32 %v2871_v59, %v900_v39  ;;  %v902_v47 = vmul.f32 %v2866_v56, %v595_v44  ;;  %v597_v48 = vpop.f32.mrb[11].mxu0 }
 0x18c   : > { %v903_v49 = vmul.f32 %v2866_v56, %v597_v48  ;;  %v1041_v50 = vadd.f32 %v2873_v61, %v901_v43 }
 0x18d   : > { %v1042_v51 = vadd.f32 %v2871_v59, %v902_v47  ;;  %860 = vmatmul.mubr.bf16.gmra.mrb[116].mxu0 %v438_v41  ;;  %v1168_v55 = vmax.f32 %v1040_v46, 0.0 }
 0x18e   : > { %869 = vmatprep.mubr.bf16.mxu0 %v2513_v0  ;;  %v1043_v52 = vadd.f32 %v2873_v61, %v903_v49  ;;  %v1169_v60 = vmax.f32 %v1041_v50, 0.0 }
 0x18f   : > { %v1170_v57 = vmax.f32 %v1042_v51, 0.0 }
 0x190   : > { %v601_v58 = vpop.f32.mrb[12].mxu0  ;;  %v1171_v62 = vmax.f32 %v1043_v52, 0.0 }
 0x191   : > { %v904_v63 = vmul.f32 %v2866_v56, %v601_v58  ;;  %v603_v1 = vpop.f32.mrb[13].mxu0  ;;  %v1292_v3 = vpack.c.bf16 %v1170_v57, %v1168_v55 }
 0x192   : > { %v905_v4 = vmul.f32 %v2866_v56, %v603_v1  ;;  %v605_v5 = vpop.f32.mrb[14].mxu0  ;;  %v1293_v6 = vpack.c.bf16 %v1171_v62, %v1169_v60 }
 0x193   : > { %v1044_v7 = vadd.f32 %v2871_v59, %v904_v63  ;;  %v906_v8 = vmul.f32 %v2866_v56, %v605_v5  ;;  %v607_v9 = vpop.f32.mrb[15].mxu0 }
 0x194   : > { %v1045_v10 = vadd.f32 %v2873_v61, %v905_v4  ;;  %v907_v11 = vmul.f32 %v2866_v56, %v607_v9  ;;  %1528 = vmatprep.mubr.bf16.mxu1 %v1293_v6 }
 0x195   : > { %v1046_v12 = vadd.f32 %v2871_v59, %v906_v8  ;;  %870 = vmatmul.mubr.bf16.gmra.mrb[120].mxu0 %v439_v2  ;;  %1529 = vmatmul.mubr.bf16.vlgmr.msra.gmra.mrb[0].mxu1 %v1292_v3  ;;  %v1172_v16 = vmax.f32 %v1044_v7, 0.0 }
 0x196   : > { %v1047_v13 = vadd.f32 %v2873_v61, %v907_v11  ;;  %879 = vmatprep.mubr.bf16.mxu0 %v2513_v0  ;;  %v1173_v19 = vmax.f32 %v1045_v10, 0.0 }
 0x197   : > { %v1174_v17 = vmax.f32 %v1046_v12, 0.0 }
 0x198   : > { %v1175_v20 = vmax.f32 %v1047_v13, 0.0  ;;  %v611_v21 = vpop.f32.mrb[16].mxu0 }
 0x199   : > { %v908_v22 = vmul.f32 %v2866_v56, %v611_v21  ;;  %v613_v23 = vpop.f32.mrb[17].mxu0  ;;  %v1294_v26 = vpack.c.bf16 %v1174_v17, %v1172_v16 }
 0x19a   : > { %v909_v27 = vmul.f32 %v2866_v56, %v613_v23  ;;  %v615_v28 = vpop.f32.mrb[18].mxu0  ;;  %v1295_v29 = vpack.c.bf16 %v1175_v20, %v1173_v19 }
 0x19b   : > { %v1048_v30 = vadd.f32 %v2871_v59, %v908_v22  ;;  %v910_v0 = vmul.f32 %v2866_v56, %v615_v28  ;;  %v617_v31 = vpop.f32.mrb[19].mxu0 }
 0x19c   : > { %v1049_v32 = vadd.f32 %v2873_v61, %v909_v27  ;;  %v911_v33 = vmul.f32 %v2866_v56, %v617_v31  ;;  %1536 = vmatprep.mubr.bf16.mxu1 %v1295_v29 }
 0x19d   : > { %v1050_v34 = vadd.f32 %v2871_v59, %v910_v0  ;;  %880 = vmatmul.mubr.bf16.gmra.mrb[124].mxu0 %v440_v25  ;;  %1537 = vmatmul.mubr.bf16.gmra.mrb[4].mxu1 %v1294_v26  ;;  %v1176_v36 = vmax.f32 %v1048_v30, 0.0 }
 0x19e   : > { %v1051_v35 = vadd.f32 %v2873_v61, %v911_v33  ;;  %1512 = vmatprep.mubr.bf16.mxu0 %v2890_v24  ;;  %v1177_v38 = vmax.f32 %v1049_v32, 0.0 }
 0x19f   : > { %v1178_v37 = vmax.f32 %v1050_v34, 0.0 }
 0x1a0   : > { %v1179_v39 = vmax.f32 %v1051_v35, 0.0  ;;  %v621_v40 = vpop.f32.mrb[20].mxu0 }
 0x1a1   : > { %v912_v41 = vmul.f32 %v2866_v56, %v621_v40  ;;  %v623_v43 = vpop.f32.mrb[21].mxu0  ;;  %v1296_v44 = vpack.c.bf16 %v1178_v37, %v1176_v36 }
 0x1a2   : > { %v913_v46 = vmul.f32 %v2866_v56, %v623_v43  ;;  %v625_v47 = vpop.f32.mrb[22].mxu0  ;;  %v1297_v48 = vpack.c.bf16 %v1179_v39, %v1177_v38 }
 0x1a3   : > { %v1052_v49 = vadd.f32 %v2871_v59, %v912_v41  ;;  %v914_v50 = vmul.f32 %v2866_v56, %v625_v47  ;;  %v627_v51 = vpop.f32.mrb[23].mxu0 }
 0x1a4   : > { %v1053_v24 = vadd.f32 %v2873_v61, %v913_v46  ;;  %v915_v52 = vmul.f32 %v2866_v56, %v627_v51  ;;  %1544 = vmatprep.mubr.bf16.mxu1 %v1297_v48 }
 0x1a5   : > { %v1054_v53 = vadd.f32 %v2871_v59, %v914_v50  ;;  %1513 = vmatmul.mubr.bf16.vlgmr.msra.gmra.mrb[128].mxu0 %v2886_v18  ;;  %1545 = vmatmul.mubr.bf16.gmra.mrb[8].mxu1 %v1296_v44  ;;  %v1180_v55 = vmax.f32 %v1052_v49, 0.0 }
 0x1a6   : > { %v1055_v54 = vadd.f32 %v2873_v61, %v915_v52  ;;  %1520 = vmatprep.mubr.bf16.mxu0 %v2905_v45  ;;  %v1181_v58 = vmax.f32 %v1053_v24, 0.0 }
 0x1a7   : > { %v1182_v57 = vmax.f32 %v1054_v53, 0.0 }
 0x1a8   : > { %v1183_v60 = vmax.f32 %v1055_v54, 0.0  ;;  %v631_v62 = vpop.f32.mrb[24].mxu0 }
 0x1a9   : > { %v916_v63 = vmul.f32 %v2866_v56, %v631_v62  ;;  %v633_v1 = vpop.f32.mrb[25].mxu0  ;;  %v1298_v2 = vpack.c.bf16 %v1182_v57, %v1180_v55 }
 0x1aa   : > { %v917_v3 = vmul.f32 %v2866_v56, %v633_v1  ;;  %v635_v4 = vpop.f32.mrb[26].mxu0  ;;  %v1299_v5 = vpack.c.bf16 %v1183_v60, %v1181_v58 }
 0x1ab   : > { %v1056_v18 = vadd.f32 %v2871_v59, %v916_v63  ;;  %v918_v6 = vmul.f32 %v2866_v56, %v635_v4  ;;  %v637_v7 = vpop.f32.mrb[27].mxu0 }
 0x1ac   : > { %v1057_v45 = vadd.f32 %v2873_v61, %v917_v3  ;;  %v919_v8 = vmul.f32 %v2866_v56, %v637_v7  ;;  %1552 = vmatprep.mubr.bf16.mxu1 %v1299_v5 }
 0x1ad   : > { %v1058_v9 = vadd.f32 %v2871_v59, %v918_v6  ;;  %1521 = vmatmul.mubr.bf16.gmra.mrb[132].mxu0 %v2902_v42  ;;  %1553 = vmatmul.mubr.bf16.gmra.mrb[12].mxu1 %v1298_v2  ;;  %v1184_v11 = vmax.f32 %v1056_v18, 0.0 }
 0x1ae   : > { %v1059_v10 = vadd.f32 %v2873_v61, %v919_v8  ;;  %v1185_v13 = vmax.f32 %v1057_v45, 0.0 }
 0x1af   : > { %v1186_v12 = vmax.f32 %v1058_v9, 0.0 }
 0x1b0   : > { %v1187_v14 = vmax.f32 %v1059_v10, 0.0  ;;  %v641_v15 = vpop.f32.mrb[28].mxu0 }
 0x1b1   : > { %v920_v16 = vmul.f32 %v2866_v56, %v641_v15  ;;  %v643_v17 = vpop.f32.mrb[29].mxu0  ;;  %v1300_v19 = vpack.c.bf16 %v1186_v12, %v1184_v11 }
 0x1b2   : > { %v921_v20 = vmul.f32 %v2866_v56, %v643_v17  ;;  %v645_v21 = vpop.f32.mrb[30].mxu0  ;;  %v1301_v22 = vpack.c.bf16 %v1187_v14, %v1185_v13 }
 0x1b3   : > { %v1060_v23 = vadd.f32 %v2871_v59, %v920_v16  ;;  %v922_v42 = vmul.f32 %v2866_v56, %v645_v21  ;;  %v647_v25 = vpop.f32.mrb[31].mxu0 }
 0x1b4   : > { %v1061_v26 = vadd.f32 %v2873_v61, %v921_v20  ;;  %v923_v27 = vmul.f32 %v2866_v56, %v647_v25  ;;  %1560 = vmatprep.mubr.bf16.mxu1 %v1301_v22 }
 0x1b5   : > { %v1062_v28 = vadd.f32 %v2871_v59, %v922_v42  ;;  %1561 = vmatmul.mubr.bf16.gmra.mrb[16].mxu1 %v1300_v19  ;;  %v1188_v30 = vmax.f32 %v1060_v23, 0.0 }
 0x1b6   : > { %v1063_v29 = vadd.f32 %v2873_v61, %v923_v27  ;;  %v1189_v31 = vmax.f32 %v1061_v26, 0.0 }
 0x1b7   : > { %v1190_v0 = vmax.f32 %v1062_v28, 0.0 }
 0x1b8   : > { %v1191_v32 = vmax.f32 %v1063_v29, 0.0  ;;  %v651_v33 = vpop.f32.mrb[32].mxu0 }
 0x1b9   : > { %v924_v34 = vmul.f32 %v2866_v56, %v651_v33  ;;  %v653_v35 = vpop.f32.mrb[33].mxu0  ;;  %v1302_v36 = vpack.c.bf16 %v1190_v0, %v1188_v30 }
 0x1ba   : > { %v925_v37 = vmul.f32 %v2866_v56, %v653_v35  ;;  %v655_v38 = vpop.f32.mrb[34].mxu0  ;;  %v1303_v39 = vpack.c.bf16 %v1191_v32, %v1189_v31 }
 0x1bb   : > { %v1064_v40 = vadd.f32 %v2871_v59, %v924_v34  ;;  %v926_v41 = vmul.f32 %v2866_v56, %v655_v38  ;;  %v657_v43 = vpop.f32.mrb[35].mxu0 }
 0x1bc   : > { %v1065_v44 = vadd.f32 %v2873_v61, %v925_v37  ;;  %v927_v46 = vmul.f32 %v2866_v56, %v657_v43  ;;  %1568 = vmatprep.mubr.bf16.mxu1 %v1303_v39 }
 0x1bd   : > { %v1066_v47 = vadd.f32 %v2871_v59, %v926_v41  ;;  %1569 = vmatmul.mubr.bf16.gmra.mrb[20].mxu1 %v1302_v36  ;;  %v1192_v49 = vmax.f32 %v1064_v40, 0.0 }
 0x1be   : > { %v1067_v48 = vadd.f32 %v2873_v61, %v927_v46  ;;  %v1193_v51 = vmax.f32 %v1065_v44, 0.0 }
 0x1bf   : > { %v1194_v50 = vmax.f32 %v1066_v47, 0.0 }
 0x1c0   : > { %v1195_v24 = vmax.f32 %v1067_v48, 0.0  ;;  %v661_v52 = vpop.f32.mrb[36].mxu0 }
 0x1c1   : > { %v928_v53 = vmul.f32 %v2866_v56, %v661_v52  ;;  %v663_v54 = vpop.f32.mrb[37].mxu0  ;;  %v1304_v55 = vpack.c.bf16 %v1194_v50, %v1192_v49 }
 0x1c2   : > { %v929_v57 = vmul.f32 %v2866_v56, %v663_v54  ;;  %v665_v58 = vpop.f32.mrb[38].mxu0  ;;  %v1305_v60 = vpack.c.bf16 %v1195_v24, %v1193_v51 }
 0x1c3   : > { %v1068_v62 = vadd.f32 %v2871_v59, %v928_v53  ;;  %v930_v63 = vmul.f32 %v2866_v56, %v665_v58  ;;  %v667_v1 = vpop.f32.mrb[39].mxu0 }
 0x1c4   : > { %v1069_v2 = vadd.f32 %v2873_v61, %v929_v57  ;;  %v931_v3 = vmul.f32 %v2866_v56, %v667_v1  ;;  %1576 = vmatprep.mubr.bf16.mxu1 %v1305_v60 }
 0x1c5   : > { %v1070_v4 = vadd.f32 %v2871_v59, %v930_v63  ;;  %1577 = vmatmul.mubr.bf16.gmra.mrb[24].mxu1 %v1304_v55  ;;  %v1196_v18 = vmax.f32 %v1068_v62, 0.0 }
 0x1c6   : > { %v1071_v5 = vadd.f32 %v2873_v61, %v931_v3  ;;  %v1197_v7 = vmax.f32 %v1069_v2, 0.0 }
 0x1c7   : > { %v1198_v6 = vmax.f32 %v1070_v4, 0.0 }
 0x1c8   : > { %v1199_v45 = vmax.f32 %v1071_v5, 0.0  ;;  %v671_v8 = vpop.f32.mrb[40].mxu0 }
 0x1c9   : > { %v932_v9 = vmul.f32 %v2866_v56, %v671_v8  ;;  %v673_v10 = vpop.f32.mrb[41].mxu0  ;;  %v1306_v11 = vpack.c.bf16 %v1198_v6, %v1196_v18 }
 0x1ca   : > { %v933_v12 = vmul.f32 %v2866_v56, %v673_v10  ;;  %v675_v13 = vpop.f32.mrb[42].mxu0  ;;  %v1307_v14 = vpack.c.bf16 %v1199_v45, %v1197_v7 }
 0x1cb   : > { %v1072_v15 = vadd.f32 %v2871_v59, %v932_v9  ;;  %v934_v16 = vmul.f32 %v2866_v56, %v675_v13  ;;  %v677_v17 = vpop.f32.mrb[43].mxu0 }
 0x1cc   : > { %v1073_v19 = vadd.f32 %v2873_v61, %v933_v12  ;;  %v935_v20 = vmul.f32 %v2866_v56, %v677_v17  ;;  %1584 = vmatprep.mubr.bf16.mxu1 %v1307_v14 }
 0x1cd   : > { %v1074_v21 = vadd.f32 %v2871_v59, %v934_v16  ;;  %1585 = vmatmul.mubr.bf16.gmra.mrb[28].mxu1 %v1306_v11  ;;  %v1200_v23 = vmax.f32 %v1072_v15, 0.0 }
 0x1ce   : > { %v1075_v22 = vadd.f32 %v2873_v61, %v935_v20  ;;  %v1201_v25 = vmax.f32 %v1073_v19, 0.0 }
 0x1cf   : > { %v1202_v42 = vmax.f32 %v1074_v21, 0.0 }
 0x1d0   : > { %v1203_v26 = vmax.f32 %v1075_v22, 0.0  ;;  %v681_v27 = vpop.f32.mrb[44].mxu0 }
 0x1d1   : > { %v936_v28 = vmul.f32 %v2866_v56, %v681_v27  ;;  %v683_v29 = vpop.f32.mrb[45].mxu0  ;;  %v1308_v30 = vpack.c.bf16 %v1202_v42, %v1200_v23 }
 0x1d2   : > { %v937_v0 = vmul.f32 %v2866_v56, %v683_v29  ;;  %v685_v31 = vpop.f32.mrb[46].mxu0  ;;  %v1309_v32 = vpack.c.bf16 %v1203_v26, %v1201_v25 }
 0x1d3   : > { %v1076_v33 = vadd.f32 %v2871_v59, %v936_v28  ;;  %v938_v34 = vmul.f32 %v2866_v56, %v685_v31  ;;  %v687_v35 = vpop.f32.mrb[47].mxu0 }
 0x1d4   : > { %v1077_v36 = vadd.f32 %v2873_v61, %v937_v0  ;;  %v939_v37 = vmul.f32 %v2866_v56, %v687_v35  ;;  %1592 = vmatprep.mubr.bf16.mxu1 %v1309_v32 }
 0x1d5   : > { %v1078_v38 = vadd.f32 %v2871_v59, %v938_v34  ;;  %1593 = vmatmul.mubr.bf16.gmra.mrb[32].mxu1 %v1308_v30  ;;  %v1204_v40 = vmax.f32 %v1076_v33, 0.0 }
 0x1d6   : > { %v1079_v39 = vadd.f32 %v2873_v61, %v939_v37  ;;  %v1205_v43 = vmax.f32 %v1077_v36, 0.0 }
 0x1d7   : > { %v1206_v41 = vmax.f32 %v1078_v38, 0.0 }
 0x1d8   : > { %v1207_v44 = vmax.f32 %v1079_v39, 0.0  ;;  %v691_v46 = vpop.f32.mrb[48].mxu0 }
 0x1d9   : > { %v940_v47 = vmul.f32 %v2866_v56, %v691_v46  ;;  %v693_v48 = vpop.f32.mrb[49].mxu0  ;;  %v1310_v49 = vpack.c.bf16 %v1206_v41, %v1204_v40 }
 0x1da   : > { %v941_v50 = vmul.f32 %v2866_v56, %v693_v48  ;;  %v695_v51 = vpop.f32.mrb[50].mxu0  ;;  %v1311_v24 = vpack.c.bf16 %v1207_v44, %v1205_v43 }
 0x1db   : > { %v1080_v52 = vadd.f32 %v2871_v59, %v940_v47  ;;  %v942_v53 = vmul.f32 %v2866_v56, %v695_v51  ;;  %v697_v54 = vpop.f32.mrb[51].mxu0 }
 0x1dc   : > { %v1081_v55 = vadd.f32 %v2873_v61, %v941_v50  ;;  %v943_v57 = vmul.f32 %v2866_v56, %v697_v54  ;;  %1600 = vmatprep.mubr.bf16.mxu1 %v1311_v24 }
 0x1dd   : > { %v1082_v58 = vadd.f32 %v2871_v59, %v942_v53  ;;  %1601 = vmatmul.mubr.bf16.gmra.mrb[36].mxu1 %v1310_v49  ;;  %v1208_v62 = vmax.f32 %v1080_v52, 0.0 }
 0x1de   : > { %v1083_v60 = vadd.f32 %v2873_v61, %v943_v57  ;;  %v1209_v1 = vmax.f32 %v1081_v55, 0.0 }
 0x1df   : > { %v1210_v63 = vmax.f32 %v1082_v58, 0.0 }
 0x1e0   : > { %v1211_v2 = vmax.f32 %v1083_v60, 0.0  ;;  %v701_v3 = vpop.f32.mrb[52].mxu0 }
 0x1e1   : > { %v944_v4 = vmul.f32 %v2866_v56, %v701_v3  ;;  %v703_v5 = vpop.f32.mrb[53].mxu0  ;;  %v1312_v18 = vpack.c.bf16 %v1210_v63, %v1208_v62 }
 0x1e2   : > { %v945_v6 = vmul.f32 %v2866_v56, %v703_v5  ;;  %v705_v7 = vpop.f32.mrb[54].mxu0  ;;  %v1313_v45 = vpack.c.bf16 %v1211_v2, %v1209_v1 }
 0x1e3   : > { %v1084_v8 = vadd.f32 %v2871_v59, %v944_v4  ;;  %v946_v9 = vmul.f32 %v2866_v56, %v705_v7  ;;  %v707_v10 = vpop.f32.mrb[55].mxu0 }
 0x1e4   : > { %v1085_v11 = vadd.f32 %v2873_v61, %v945_v6  ;;  %v947_v12 = vmul.f32 %v2866_v56, %v707_v10  ;;  %1608 = vmatprep.mubr.bf16.mxu1 %v1313_v45 }
 0x1e5   : > { %v1086_v13 = vadd.f32 %v2871_v59, %v946_v9  ;;  %1609 = vmatmul.mubr.bf16.gmra.mrb[40].mxu1 %v1312_v18  ;;  %v1212_v15 = vmax.f32 %v1084_v8, 0.0 }
 0x1e6   : > { %v1087_v14 = vadd.f32 %v2873_v61, %v947_v12  ;;  %v1213_v17 = vmax.f32 %v1085_v11, 0.0 }
 0x1e7   : > { %v1214_v16 = vmax.f32 %v1086_v13, 0.0 }
 0x1e8   : > { %v1215_v19 = vmax.f32 %v1087_v14, 0.0  ;;  %v711_v20 = vpop.f32.mrb[56].mxu0 }
 0x1e9   : > { %v948_v21 = vmul.f32 %v2866_v56, %v711_v20  ;;  %v713_v22 = vpop.f32.mrb[57].mxu0  ;;  %v1314_v23 = vpack.c.bf16 %v1214_v16, %v1212_v15 }
 0x1ea   : > { %v949_v42 = vmul.f32 %v2866_v56, %v713_v22  ;;  %v715_v25 = vpop.f32.mrb[58].mxu0  ;;  %v1315_v26 = vpack.c.bf16 %v1215_v19, %v1213_v17 }
 0x1eb   : > { %v1088_v27 = vadd.f32 %v2871_v59, %v948_v21  ;;  %v950_v28 = vmul.f32 %v2866_v56, %v715_v25  ;;  %v717_v29 = vpop.f32.mrb[59].mxu0 }
 0x1ec   : > { %v1089_v30 = vadd.f32 %v2873_v61, %v949_v42  ;;  %v951_v0 = vmul.f32 %v2866_v56, %v717_v29  ;;  %1616 = vmatprep.mubr.bf16.mxu1 %v1315_v26 }
 0x1ed   : > { %v1090_v31 = vadd.f32 %v2871_v59, %v950_v28  ;;  %1617 = vmatmul.mubr.bf16.gmra.mrb[44].mxu1 %v1314_v23  ;;  %v1216_v33 = vmax.f32 %v1088_v27, 0.0 }
 0x1ee   : > { %v1091_v32 = vadd.f32 %v2873_v61, %v951_v0  ;;  %v1217_v35 = vmax.f32 %v1089_v30, 0.0 }
 0x1ef   : > { %v1218_v34 = vmax.f32 %v1090_v31, 0.0 }
 0x1f0   : > { %v1219_v36 = vmax.f32 %v1091_v32, 0.0  ;;  %v721_v37 = vpop.f32.mrb[60].mxu0 }
 0x1f1   : > { %v952_v38 = vmul.f32 %v2866_v56, %v721_v37  ;;  %v723_v39 = vpop.f32.mrb[61].mxu0  ;;  %v1316_v40 = vpack.c.bf16 %v1218_v34, %v1216_v33 }
 0x1f2   : > { %v953_v41 = vmul.f32 %v2866_v56, %v723_v39  ;;  %v725_v43 = vpop.f32.mrb[62].mxu0  ;;  %v1317_v44 = vpack.c.bf16 %v1219_v36, %v1217_v35 }
 0x1f3   : > { %v1092_v46 = vadd.f32 %v2871_v59, %v952_v38  ;;  %v954_v47 = vmul.f32 %v2866_v56, %v725_v43  ;;  %v727_v48 = vpop.f32.mrb[63].mxu0 }
 0x1f4   : > { %v1093_v49 = vadd.f32 %v2873_v61, %v953_v41  ;;  %v955_v50 = vmul.f32 %v2866_v56, %v727_v48  ;;  %1624 = vmatprep.mubr.bf16.mxu1 %v1317_v44 }
 0x1f5   : > { %v1094_v51 = vadd.f32 %v2871_v59, %v954_v47  ;;  %1625 = vmatmul.mubr.bf16.gmra.mrb[48].mxu1 %v1316_v40  ;;  %v1220_v52 = vmax.f32 %v1092_v46, 0.0 }
 0x1f6   : > { %v1095_v24 = vadd.f32 %v2873_v61, %v955_v50  ;;  %v1221_v54 = vmax.f32 %v1093_v49, 0.0 }
 0x1f7   : > { %v1222_v53 = vmax.f32 %v1094_v51, 0.0 }
 0x1f8   : > { %v1223_v55 = vmax.f32 %v1095_v24, 0.0  ;;  %v731_v57 = vpop.f32.mrb[64].mxu0 }
 0x1f9   : > { %v956_v58 = vmul.f32 %v2866_v56, %v731_v57  ;;  %v733_v60 = vpop.f32.mrb[65].mxu0  ;;  %v1318_v62 = vpack.c.bf16 %v1222_v53, %v1220_v52 }
 0x1fa   : > { %v957_v63 = vmul.f32 %v2866_v56, %v733_v60  ;;  %v735_v1 = vpop.f32.mrb[66].mxu0  ;;  %v1319_v2 = vpack.c.bf16 %v1223_v55, %v1221_v54 }
 0x1fb   : > { %v1096_v3 = vadd.f32 %v2871_v59, %v956_v58  ;;  %v958_v4 = vmul.f32 %v2866_v56, %v735_v1  ;;  %v737_v5 = vpop.f32.mrb[67].mxu0 }
 0x1fc   : > { %v1097_v18 = vadd.f32 %v2873_v61, %v957_v63  ;;  %v959_v6 = vmul.f32 %v2866_v56, %v737_v5  ;;  %1632 = vmatprep.mubr.bf16.mxu1 %v1319_v2 }
 0x1fd   : > { %v1098_v7 = vadd.f32 %v2871_v59, %v958_v4  ;;  %1633 = vmatmul.mubr.bf16.gmra.mrb[52].mxu1 %v1318_v62  ;;  %v1224_v8 = vmax.f32 %v1096_v3, 0.0 }
 0x1fe   : > { %v1099_v45 = vadd.f32 %v2873_v61, %v959_v6  ;;  %v1225_v10 = vmax.f32 %v1097_v18, 0.0 }
 0x1ff   : > { %v1226_v9 = vmax.f32 %v1098_v7, 0.0 }
 0x200   : > { %v1227_v11 = vmax.f32 %v1099_v45, 0.0  ;;  %v741_v12 = vpop.f32.mrb[68].mxu0 }
 0x201   : > { %v960_v13 = vmul.f32 %v2866_v56, %v741_v12  ;;  %v743_v14 = vpop.f32.mrb[69].mxu0  ;;  %v1320_v15 = vpack.c.bf16 %v1226_v9, %v1224_v8 }
 0x202   : > { %v961_v16 = vmul.f32 %v2866_v56, %v743_v14  ;;  %v745_v17 = vpop.f32.mrb[70].mxu0  ;;  %v1321_v19 = vpack.c.bf16 %v1227_v11, %v1225_v10 }
 0x203   : > { %v1100_v20 = vadd.f32 %v2871_v59, %v960_v13  ;;  %v962_v21 = vmul.f32 %v2866_v56, %v745_v17  ;;  %v747_v22 = vpop.f32.mrb[71].mxu0 }
 0x204   : > { %v1101_v23 = vadd.f32 %v2873_v61, %v961_v16  ;;  %v963_v42 = vmul.f32 %v2866_v56, %v747_v22  ;;  %1640 = vmatprep.mubr.bf16.mxu1 %v1321_v19 }
 0x205   : > { %v1102_v25 = vadd.f32 %v2871_v59, %v962_v21  ;;  %1641 = vmatmul.mubr.bf16.gmra.mrb[56].mxu1 %v1320_v15  ;;  %v1228_v27 = vmax.f32 %v1100_v20, 0.0 }
 0x206   : > { %v1103_v26 = vadd.f32 %v2873_v61, %v963_v42  ;;  %v1229_v29 = vmax.f32 %v1101_v23, 0.0 }
 0x207   : > { %v1230_v28 = vmax.f32 %v1102_v25, 0.0 }
 0x208   : > { %v1231_v30 = vmax.f32 %v1103_v26, 0.0  ;;  %v751_v0 = vpop.f32.mrb[72].mxu0 }
 0x209   : > { %v964_v31 = vmul.f32 %v2866_v56, %v751_v0  ;;  %v753_v32 = vpop.f32.mrb[73].mxu0  ;;  %v1322_v33 = vpack.c.bf16 %v1230_v28, %v1228_v27 }
 0x20a   : > { %v965_v34 = vmul.f32 %v2866_v56, %v753_v32  ;;  %v755_v35 = vpop.f32.mrb[74].mxu0  ;;  %v1323_v36 = vpack.c.bf16 %v1231_v30, %v1229_v29 }
 0x20b   : > { %v1104_v37 = vadd.f32 %v2871_v59, %v964_v31  ;;  %v966_v38 = vmul.f32 %v2866_v56, %v755_v35  ;;  %v757_v39 = vpop.f32.mrb[75].mxu0 }
 0x20c   : > { %v1105_v40 = vadd.f32 %v2873_v61, %v965_v34  ;;  %v967_v41 = vmul.f32 %v2866_v56, %v757_v39  ;;  %1648 = vmatprep.mubr.bf16.mxu1 %v1323_v36 }
 0x20d   : > { %v1106_v43 = vadd.f32 %v2871_v59, %v966_v38  ;;  %1649 = vmatmul.mubr.bf16.gmra.mrb[60].mxu1 %v1322_v33  ;;  %v1232_v46 = vmax.f32 %v1104_v37, 0.0 }
 0x20e   : > { %v1107_v44 = vadd.f32 %v2873_v61, %v967_v41  ;;  %v1233_v48 = vmax.f32 %v1105_v40, 0.0 }
 0x20f   : > { %v1234_v47 = vmax.f32 %v1106_v43, 0.0 }
 0x210   : > { %v1235_v49 = vmax.f32 %v1107_v44, 0.0  ;;  %v761_v50 = vpop.f32.mrb[76].mxu0 }
 0x211   : > { %v968_v51 = vmul.f32 %v2866_v56, %v761_v50  ;;  %v763_v24 = vpop.f32.mrb[77].mxu0  ;;  %v1324_v52 = vpack.c.bf16 %v1234_v47, %v1232_v46 }
 0x212   : > { %v969_v53 = vmul.f32 %v2866_v56, %v763_v24  ;;  %v765_v54 = vpop.f32.mrb[78].mxu0  ;;  %v1325_v55 = vpack.c.bf16 %v1235_v49, %v1233_v48 }
 0x213   : > { %v1108_v57 = vadd.f32 %v2871_v59, %v968_v51  ;;  %v970_v58 = vmul.f32 %v2866_v56, %v765_v54  ;;  %v767_v60 = vpop.f32.mrb[79].mxu0 }
 0x214   : > { %v1109_v62 = vadd.f32 %v2873_v61, %v969_v53  ;;  %v971_v63 = vmul.f32 %v2866_v56, %v767_v60  ;;  %1656 = vmatprep.mubr.bf16.mxu1 %v1325_v55 }
 0x215   : > { %v1110_v1 = vadd.f32 %v2871_v59, %v970_v58  ;;  %1657 = vmatmul.mubr.bf16.gmra.mrb[64].mxu1 %v1324_v52  ;;  %v1236_v3 = vmax.f32 %v1108_v57, 0.0 }
 0x216   : > { %v1111_v2 = vadd.f32 %v2873_v61, %v971_v63  ;;  %v1237_v5 = vmax.f32 %v1109_v62, 0.0 }
 0x217   : > { %v1238_v4 = vmax.f32 %v1110_v1, 0.0 }
 0x218   : > { %v1239_v18 = vmax.f32 %v1111_v2, 0.0  ;;  %v771_v6 = vpop.f32.mrb[80].mxu0 }
 0x219   : > { %v972_v7 = vmul.f32 %v2866_v56, %v771_v6  ;;  %v773_v45 = vpop.f32.mrb[81].mxu0  ;;  %v1326_v8 = vpack.c.bf16 %v1238_v4, %v1236_v3 }
 0x21a   : > { %v973_v9 = vmul.f32 %v2866_v56, %v773_v45  ;;  %v775_v10 = vpop.f32.mrb[82].mxu0  ;;  %v1327_v11 = vpack.c.bf16 %v1239_v18, %v1237_v5 }
 0x21b   : > { %v1112_v12 = vadd.f32 %v2871_v59, %v972_v7  ;;  %v974_v13 = vmul.f32 %v2866_v56, %v775_v10  ;;  %v777_v14 = vpop.f32.mrb[83].mxu0 }
 0x21c   : > { %v1113_v15 = vadd.f32 %v2873_v61, %v973_v9  ;;  %v975_v16 = vmul.f32 %v2866_v56, %v777_v14  ;;  %1664 = vmatprep.mubr.bf16.mxu1 %v1327_v11 }
 0x21d   : > { %v1114_v17 = vadd.f32 %v2871_v59, %v974_v13  ;;  %1665 = vmatmul.mubr.bf16.gmra.mrb[68].mxu1 %v1326_v8  ;;  %v1240_v20 = vmax.f32 %v1112_v12, 0.0 }
 0x21e   : > { %v1115_v19 = vadd.f32 %v2873_v61, %v975_v16  ;;  %v1241_v22 = vmax.f32 %v1113_v15, 0.0 }
 0x21f   : > { %v1242_v21 = vmax.f32 %v1114_v17, 0.0 }
 0x220   : > { %v1243_v23 = vmax.f32 %v1115_v19, 0.0  ;;  %v781_v42 = vpop.f32.mrb[84].mxu0 }
 0x221   : > { %v976_v25 = vmul.f32 %v2866_v56, %v781_v42  ;;  %v783_v26 = vpop.f32.mrb[85].mxu0  ;;  %v1328_v27 = vpack.c.bf16 %v1242_v21, %v1240_v20 }
 0x222   : > { %v977_v28 = vmul.f32 %v2866_v56, %v783_v26  ;;  %v785_v29 = vpop.f32.mrb[86].mxu0  ;;  %v1329_v30 = vpack.c.bf16 %v1243_v23, %v1241_v22 }
 0x223   : > { %v1116_v0 = vadd.f32 %v2871_v59, %v976_v25  ;;  %v978_v31 = vmul.f32 %v2866_v56, %v785_v29  ;;  %v787_v32 = vpop.f32.mrb[87].mxu0 }
 0x224   : > { %v1117_v33 = vadd.f32 %v2873_v61, %v977_v28  ;;  %v979_v34 = vmul.f32 %v2866_v56, %v787_v32  ;;  %1672 = vmatprep.mubr.bf16.mxu1 %v1329_v30 }
 0x225   : > { %v1118_v35 = vadd.f32 %v2871_v59, %v978_v31  ;;  %1673 = vmatmul.mubr.bf16.gmra.mrb[72].mxu1 %v1328_v27  ;;  %v1244_v37 = vmax.f32 %v1116_v0, 0.0 }
 0x226   : > { %v1119_v36 = vadd.f32 %v2873_v61, %v979_v34  ;;  %v1245_v39 = vmax.f32 %v1117_v33, 0.0 }
 0x227   : > { %v1246_v38 = vmax.f32 %v1118_v35, 0.0 }
 0x228   : > { %v1247_v40 = vmax.f32 %v1119_v36, 0.0  ;;  %v791_v41 = vpop.f32.mrb[88].mxu0 }
 0x229   : > { %v980_v43 = vmul.f32 %v2866_v56, %v791_v41  ;;  %v793_v44 = vpop.f32.mrb[89].mxu0  ;;  %v1330_v46 = vpack.c.bf16 %v1246_v38, %v1244_v37 }
 0x22a   : > { %v981_v47 = vmul.f32 %v2866_v56, %v793_v44  ;;  %v795_v48 = vpop.f32.mrb[90].mxu0  ;;  %v1331_v49 = vpack.c.bf16 %v1247_v40, %v1245_v39 }
 0x22b   : > { %v1120_v50 = vadd.f32 %v2871_v59, %v980_v43  ;;  %v982_v51 = vmul.f32 %v2866_v56, %v795_v48  ;;  %v797_v24 = vpop.f32.mrb[91].mxu0 }
 0x22c   : > { %v1121_v52 = vadd.f32 %v2873_v61, %v981_v47  ;;  %v983_v53 = vmul.f32 %v2866_v56, %v797_v24  ;;  %1680 = vmatprep.mubr.bf16.mxu1 %v1331_v49 }
 0x22d   : > { %v1122_v54 = vadd.f32 %v2871_v59, %v982_v51  ;;  %1681 = vmatmul.mubr.bf16.gmra.mrb[76].mxu1 %v1330_v46  ;;  %v1248_v57 = vmax.f32 %v1120_v50, 0.0 }
 0x22e   : > { %v1123_v55 = vadd.f32 %v2873_v61, %v983_v53  ;;  %v1249_v60 = vmax.f32 %v1121_v52, 0.0 }
 0x22f   : > { %v1250_v58 = vmax.f32 %v1122_v54, 0.0 }
 0x230   : > { %v1251_v62 = vmax.f32 %v1123_v55, 0.0  ;;  %v801_v63 = vpop.f32.mrb[92].mxu0 }
 0x231   : > { %v984_v1 = vmul.f32 %v2866_v56, %v801_v63  ;;  %v803_v2 = vpop.f32.mrb[93].mxu0  ;;  %v1332_v3 = vpack.c.bf16 %v1250_v58, %v1248_v57 }
 0x232   : > { %v985_v4 = vmul.f32 %v2866_v56, %v803_v2  ;;  %v805_v5 = vpop.f32.mrb[94].mxu0  ;;  %v1333_v18 = vpack.c.bf16 %v1251_v62, %v1249_v60 }
 0x233   : > { %v1124_v6 = vadd.f32 %v2871_v59, %v984_v1  ;;  %v986_v7 = vmul.f32 %v2866_v56, %v805_v5  ;;  %v807_v45 = vpop.f32.mrb[95].mxu0 }
 0x234   : > { %v1125_v8 = vadd.f32 %v2873_v61, %v985_v4  ;;  %v987_v9 = vmul.f32 %v2866_v56, %v807_v45  ;;  %1688 = vmatprep.mubr.bf16.mxu1 %v1333_v18 }
 0x235   : > { %v1126_v10 = vadd.f32 %v2871_v59, %v986_v7  ;;  %1689 = vmatmul.mubr.bf16.gmra.mrb[80].mxu1 %v1332_v3  ;;  %v1252_v12 = vmax.f32 %v1124_v6, 0.0 }
 0x236   : > { %v1127_v11 = vadd.f32 %v2873_v61, %v987_v9  ;;  %v1253_v14 = vmax.f32 %v1125_v8, 0.0 }
 0x237   : > { %v1254_v13 = vmax.f32 %v1126_v10, 0.0 }
 0x238   : > { %v1255_v15 = vmax.f32 %v1127_v11, 0.0  ;;  %v811_v16 = vpop.f32.mrb[96].mxu0 }
 0x239   : > { %v988_v17 = vmul.f32 %v2866_v56, %v811_v16  ;;  %v813_v19 = vpop.f32.mrb[97].mxu0  ;;  %v1334_v20 = vpack.c.bf16 %v1254_v13, %v1252_v12 }
 0x23a   : > { %v989_v21 = vmul.f32 %v2866_v56, %v813_v19  ;;  %v815_v22 = vpop.f32.mrb[98].mxu0  ;;  %v1335_v23 = vpack.c.bf16 %v1255_v15, %v1253_v14 }
 0x23b   : > { %v1128_v42 = vadd.f32 %v2871_v59, %v988_v17  ;;  %v990_v25 = vmul.f32 %v2866_v56, %v815_v22  ;;  %v817_v26 = vpop.f32.mrb[99].mxu0 }
 0x23c   : > { %v1129_v27 = vadd.f32 %v2873_v61, %v989_v21  ;;  %v991_v28 = vmul.f32 %v2866_v56, %v817_v26  ;;  %1696 = vmatprep.mubr.bf16.mxu1 %v1335_v23 }
 0x23d   : > { %v1130_v29 = vadd.f32 %v2871_v59, %v990_v25  ;;  %1697 = vmatmul.mubr.bf16.gmra.mrb[84].mxu1 %v1334_v20  ;;  %v1256_v0 = vmax.f32 %v1128_v42, 0.0 }
 0x23e   : > { %v1131_v30 = vadd.f32 %v2873_v61, %v991_v28  ;;  %v1257_v32 = vmax.f32 %v1129_v27, 0.0 }
 0x23f   : > { %v1258_v31 = vmax.f32 %v1130_v29, 0.0 }
 0x240   : > { %v1259_v33 = vmax.f32 %v1131_v30, 0.0  ;;  %v821_v34 = vpop.f32.mrb[100].mxu0 }
 0x241   : > { %v992_v35 = vmul.f32 %v2866_v56, %v821_v34  ;;  %v823_v36 = vpop.f32.mrb[101].mxu0  ;;  %v1336_v37 = vpack.c.bf16 %v1258_v31, %v1256_v0 }
 0x242   : > { %v993_v38 = vmul.f32 %v2866_v56, %v823_v36  ;;  %v825_v39 = vpop.f32.mrb[102].mxu0  ;;  %v1337_v40 = vpack.c.bf16 %v1259_v33, %v1257_v32 }
 0x243   : > { %v1132_v41 = vadd.f32 %v2871_v59, %v992_v35  ;;  %v994_v43 = vmul.f32 %v2866_v56, %v825_v39  ;;  %v827_v44 = vpop.f32.mrb[103].mxu0 }
 0x244   : > { %v1133_v46 = vadd.f32 %v2873_v61, %v993_v38  ;;  %v995_v47 = vmul.f32 %v2866_v56, %v827_v44  ;;  %1704 = vmatprep.mubr.bf16.mxu1 %v1337_v40 }
 0x245   : > { %v1134_v48 = vadd.f32 %v2871_v59, %v994_v43  ;;  %1705 = vmatmul.mubr.bf16.gmra.mrb[88].mxu1 %v1336_v37  ;;  %v1260_v50 = vmax.f32 %v1132_v41, 0.0 }
 0x246   : > { %v1135_v49 = vadd.f32 %v2873_v61, %v995_v47  ;;  %v1261_v24 = vmax.f32 %v1133_v46, 0.0 }
 0x247   : > { %v1262_v51 = vmax.f32 %v1134_v48, 0.0 }
 0x248   : > { %v1263_v52 = vmax.f32 %v1135_v49, 0.0  ;;  %v831_v53 = vpop.f32.mrb[104].mxu0 }
 0x249   : > { %v996_v54 = vmul.f32 %v2866_v56, %v831_v53  ;;  %v833_v55 = vpop.f32.mrb[105].mxu0  ;;  %v1338_v57 = vpack.c.bf16 %v1262_v51, %v1260_v50 }
 0x24a   : > { %v997_v58 = vmul.f32 %v2866_v56, %v833_v55  ;;  %v835_v60 = vpop.f32.mrb[106].mxu0  ;;  %v1339_v62 = vpack.c.bf16 %v1263_v52, %v1261_v24 }
 0x24b   : > { %v1136_v63 = vadd.f32 %v2871_v59, %v996_v54  ;;  %v998_v1 = vmul.f32 %v2866_v56, %v835_v60  ;;  %v837_v2 = vpop.f32.mrb[107].mxu0 }
 0x24c   : > { %v1137_v3 = vadd.f32 %v2873_v61, %v997_v58  ;;  %v999_v4 = vmul.f32 %v2866_v56, %v837_v2  ;;  %1712 = vmatprep.mubr.bf16.mxu1 %v1339_v62 }
 0x24d   : > { %v1138_v5 = vadd.f32 %v2871_v59, %v998_v1  ;;  %1713 = vmatmul.mubr.bf16.gmra.mrb[92].mxu1 %v1338_v57  ;;  %v1264_v6 = vmax.f32 %v1136_v63, 0.0  ;;  %v3139_v63 = vstv %s1769_s5 }
 0x24e   : > { %v1139_v18 = vadd.f32 %v2873_v61, %v999_v4  ;;  %v1265_v45 = vmax.f32 %v1137_v3, 0.0 }
 0x24f   : > { %v1266_v7 = vmax.f32 %v1138_v5, 0.0 }
 0x250   : > { %v1267_v8 = vmax.f32 %v1139_v18, 0.0  ;;  %v841_v9 = vpop.f32.mrb[108].mxu0 }
 0x251   : > { %v1000_v10 = vmul.f32 %v2866_v56, %v841_v9  ;;  %v843_v11 = vpop.f32.mrb[109].mxu0  ;;  %v1340_v12 = vpack.c.bf16 %v1266_v7, %v1264_v6  ;;  %v3144_v6 = vld [vmem:[%s3427_s6] ss:$0 sm:$0xff] }
 0x252   : > { %v1001_v13 = vmul.f32 %v2866_v56, %v843_v11  ;;  %v845_v14 = vpop.f32.mrb[110].mxu0  ;;  %v1341_v15 = vpack.c.bf16 %v1267_v8, %v1265_v45 }
 0x253   : > { %v1140_v16 = vadd.f32 %v2871_v59, %v1000_v10  ;;  %v1002_v17 = vmul.f32 %v2866_v56, %v845_v14  ;;  %v847_v19 = vpop.f32.mrb[111].mxu0 }
 0x254   : > { %v1141_v20 = vadd.f32 %v2873_v61, %v1001_v13  ;;  %v1003_v21 = vmul.f32 %v2866_v56, %v847_v19  ;;  %1720 = vmatprep.mubr.bf16.mxu1 %v1341_v15 }
 0x255   : > { %v1142_v22 = vadd.f32 %v2871_v59, %v1002_v17  ;;  %1721 = vmatmul.mubr.bf16.gmra.mrb[96].mxu1 %v1340_v12  ;;  %v1268_v42 = vmax.f32 %v1140_v16, 0.0 }
 0x256   : > { %v1143_v23 = vadd.f32 %v2873_v61, %v1003_v21  ;;  %v1269_v26 = vmax.f32 %v1141_v20, 0.0 }
 0x257   : > { %v1270_v25 = vmax.f32 %v1142_v22, 0.0 }
 0x258   : > { %v1271_v27 = vmax.f32 %v1143_v23, 0.0  ;;  %v851_v28 = vpop.f32.mrb[112].mxu0 }
 0x259   : > { %v1004_v29 = vmul.f32 %v2866_v56, %v851_v28  ;;  %v853_v30 = vpop.f32.mrb[113].mxu0  ;;  %v1342_v0 = vpack.c.bf16 %v1270_v25, %v1268_v42 }
 0x25a   : > { %v1005_v31 = vmul.f32 %v2866_v56, %v853_v30  ;;  %v855_v32 = vpop.f32.mrb[114].mxu0  ;;  %v1343_v33 = vpack.c.bf16 %v1271_v27, %v1269_v26 }
 0x25b   : > { %v1144_v34 = vadd.f32 %v2871_v59, %v1004_v29  ;;  %v1006_v35 = vmul.f32 %v2866_v56, %v855_v32  ;;  %v857_v36 = vpop.f32.mrb[115].mxu0 }
 0x25c   : > { %v1145_v37 = vadd.f32 %v2873_v61, %v1005_v31  ;;  %v1007_v38 = vmul.f32 %v2866_v56, %v857_v36  ;;  %1728 = vmatprep.mubr.bf16.mxu1 %v1343_v33 }
 0x25d   : > { %v1146_v39 = vadd.f32 %v2871_v59, %v1006_v35  ;;  %1729 = vmatmul.mubr.bf16.gmra.mrb[100].mxu1 %v1342_v0  ;;  %v1272_v41 = vmax.f32 %v1144_v34, 0.0 }
 0x25e   : > { %v1147_v40 = vadd.f32 %v2873_v61, %v1007_v38  ;;  %v1273_v44 = vmax.f32 %v1145_v37, 0.0 }
 0x25f   : > { %v1274_v43 = vmax.f32 %v1146_v39, 0.0 }
 0x260   : > { %v1275_v46 = vmax.f32 %v1147_v40, 0.0  ;;  %v861_v47 = vpop.f32.mrb[116].mxu0 }
 0x261   : > { %v1008_v48 = vmul.f32 %v2866_v56, %v861_v47  ;;  %v863_v49 = vpop.f32.mrb[117].mxu0  ;;  %v1344_v50 = vpack.c.bf16 %v1274_v43, %v1272_v41 }
 0x262   : > { %v1009_v51 = vmul.f32 %v2866_v56, %v863_v49  ;;  %v865_v24 = vpop.f32.mrb[118].mxu0  ;;  %v1345_v52 = vpack.c.bf16 %v1275_v46, %v1273_v44 }
 0x263   : > { %v1148_v53 = vadd.f32 %v2871_v59, %v1008_v48  ;;  %v1010_v54 = vmul.f32 %v2866_v56, %v865_v24  ;;  %v867_v55 = vpop.f32.mrb[119].mxu0 }
 0x264   : > { %v1149_v57 = vadd.f32 %v2873_v61, %v1009_v51  ;;  %v1011_v58 = vmul.f32 %v2866_v56, %v867_v55  ;;  %1736 = vmatprep.mubr.bf16.mxu1 %v1345_v52 }
 0x265   : > { %v1150_v60 = vadd.f32 %v2871_v59, %v1010_v54  ;;  %1737 = vmatmul.mubr.bf16.gmra.mrb[104].mxu1 %v1344_v50  ;;  %v1276_v1 = vmax.f32 %v1148_v53, 0.0 }
 0x266   : > { %v1151_v62 = vadd.f32 %v2873_v61, %v1011_v58  ;;  %v1277_v3 = vmax.f32 %v1149_v57, 0.0 }
 0x267   : > { %v1278_v2 = vmax.f32 %v1150_v60, 0.0 }
 0x268   : > { %v1279_v4 = vmax.f32 %v1151_v62, 0.0  ;;  %v871_v5 = vpop.f32.mrb[120].mxu0  ;;  %v1530_v18 = vpop.f32.mrb[0].mxu1 }
 0x269   : > { %v1012_v7 = vmul.f32 %v2866_v56, %v871_v5  ;;  %v1775_v45 = vmul.f32 %v3139_v63, %v1530_v18  ;;  %v873_v8 = vpop.f32.mrb[121].mxu0  ;;  %v1532_v9 = vpop.f32.mrb[1].mxu1  ;;  %v1346_v10 = vpack.c.bf16 %v1278_v2, %v1276_v1 }
 0x26a   : > { %v1013_v11 = vmul.f32 %v2866_v56, %v873_v8  ;;  %v875_v12 = vpop.f32.mrb[122].mxu0  ;;  %v1533_v13 = vpop.f32.mrb[2].mxu1  ;;  %v1347_v14 = vpack.c.bf16 %v1279_v4, %v1277_v3 }
 0x26b   : > { %v1152_v15 = vadd.f32 %v2871_v59, %v1012_v7  ;;  %v1846_v16 = vadd.f32 %v3144_v6, %v1775_v45  ;;  %v1014_v17 = vmul.f32 %v2866_v56, %v875_v12  ;;  %v1776_v19 = vmul.f32 %v3139_v63, %v1533_v13  ;;  %v877_v20 = vpop.f32.mrb[123].mxu0  ;;  %v1535_v21 = vpop.f32.mrb[3].mxu1 }
 0x26c   : > { %v1153_v22 = vadd.f32 %v2873_v61, %v1013_v11  ;;  %v1015_v23 = vmul.f32 %v2866_v56, %v877_v20  ;;  %1744 = vmatprep.mubr.bf16.mxu1 %v1347_v14 }
 0x26d   : > { %v1910_v42 = vmax.f32 %v1846_v16, 0.0  ;;  %v1154_v25 = vadd.f32 %v2871_v59, %v1014_v17  ;;  %v1847_v26 = vadd.f32 %v3144_v6, %v1776_v19  ;;  %1745 = vmatmul.mubr.bf16.gmra.mrb[108].mxu1 %v1346_v10  ;;  %v1280_v28 = vmax.f32 %v1152_v15, 0.0 }
 0x26e   : > { %v1155_v27 = vadd.f32 %v2873_v61, %v1015_v23  ;;  %v1281_v0 = vmax.f32 %v1153_v22, 0.0 }
 0x26f   : > { %1974 = vst [vmem:[%s3160_s27 + $0x20] sm:$0xff] %v1910_v42  ;;  %v1282_v29 = vmax.f32 %v1154_v25, 0.0  ;;  %v1911_v30 = vmax.f32 %v1847_v26, 0.0 }
 0x270   : > { %v1283_v31 = vmax.f32 %v1155_v27, 0.0  ;;  %v881_v32 = vpop.f32.mrb[124].mxu0  ;;  %v1538_v33 = vpop.f32.mrb[4].mxu1 }
 0x271   : > { %1975 = vst [vmem:[%s3160_s27 + $0x28] sm:$0xff] %v1911_v30  ;;  %v1016_v34 = vmul.f32 %v2866_v56, %v881_v32  ;;  %v1777_v35 = vmul.f32 %v3139_v63, %v1538_v33  ;;  %v883_v36 = vpop.f32.mrb[125].mxu0  ;;  %v1540_v37 = vpop.f32.mrb[5].mxu1  ;;  %v1348_v38 = vpack.c.bf16 %v1282_v29, %v1280_v28 }
 0x272   : > { %v1017_v39 = vmul.f32 %v2866_v56, %v883_v36  ;;  %v885_v40 = vpop.f32.mrb[126].mxu0  ;;  %v1541_v41 = vpop.f32.mrb[6].mxu1  ;;  %v1349_v43 = vpack.c.bf16 %v1283_v31, %v1281_v0 }
 0x273   : > { %v1156_v44 = vadd.f32 %v2871_v59, %v1016_v34  ;;  %v1848_v46 = vadd.f32 %v3144_v6, %v1777_v35  ;;  %v1018_v47 = vmul.f32 %v2866_v56, %v885_v40  ;;  %v1778_v48 = vmul.f32 %v3139_v63, %v1541_v41  ;;  %v887_v49 = vpop.f32.mrb[127].mxu0  ;;  %v1543_v50 = vpop.f32.mrb[7].mxu1 }
 0x274   : > { %v1157_v51 = vadd.f32 %v2873_v61, %v1017_v39  ;;  %v1019_v24 = vmul.f32 %v2866_v56, %v887_v49  ;;  %1752 = vmatprep.mubr.bf16.mxu1 %v1349_v43 }
 0x275   : > { %v1912_v52 = vmax.f32 %v1848_v46, 0.0  ;;  %v1158_v53 = vadd.f32 %v2871_v59, %v1018_v47  ;;  %v1849_v54 = vadd.f32 %v3144_v6, %v1778_v48  ;;  %1753 = vmatmul.mubr.bf16.gmra.mrb[112].mxu1 %v1348_v38  ;;  %v1284_v57 = vmax.f32 %v1156_v44, 0.0 }
 0x276   : > { %v1159_v55 = vadd.f32 %v2873_v61, %v1019_v24  ;;  %v1285_v62 = vmax.f32 %v1157_v51, 0.0 }
 0x277   : > { %1976 = vst [vmem:[%s3160_s27 + $0x30] sm:$0xff] %v1912_v52  ;;  %v1286_v58 = vmax.f32 %v1158_v53, 0.0  ;;  %v1913_v60 = vmax.f32 %v1849_v54, 0.0 }
 0x278   : > { %v1287_v1 = vmax.f32 %v1159_v55, 0.0  ;;  %v1514_v2 = vpop.f32.mrb[128].mxu0  ;;  %v1546_v3 = vpop.f32.mrb[8].mxu1 }
 0x279   : > { %1977 = vst [vmem:[%s3160_s27 + $0x38] sm:$0xff] %v1913_v60  ;;  %v1771_v56 = vmul.f32 %v3139_v63, %v1514_v2  ;;  %v1779_v4 = vmul.f32 %v3139_v63, %v1546_v3  ;;  %v1516_v5 = vpop.f32.mrb[129].mxu0  ;;  %v1548_v59 = vpop.f32.mrb[9].mxu1  ;;  %v1350_v18 = vpack.c.bf16 %v1286_v58, %v1284_v57 }
 0x27a   : > { %v1517_v7 = vpop.f32.mrb[130].mxu0  ;;  %v1549_v61 = vpop.f32.mrb[10].mxu1  ;;  %v1351_v45 = vpack.c.bf16 %v1287_v1, %v1285_v62 }
 0x27b   : > { %v1842_v8 = vadd.f32 %v3144_v6, %v1771_v56  ;;  %v1850_v9 = vadd.f32 %v3144_v6, %v1779_v4  ;;  %v1772_v10 = vmul.f32 %v3139_v63, %v1517_v7  ;;  %v1780_v11 = vmul.f32 %v3139_v63, %v1549_v61  ;;  %v1519_v12 = vpop.f32.mrb[131].mxu0  ;;  %v1551_v13 = vpop.f32.mrb[11].mxu1 }
 0x27c   : > { %1760 = vmatprep.mubr.bf16.mxu1 %v1351_v45 }
 0x27d   : > { %v1906_v14 = vmax.f32 %v1842_v8, 0.0  ;;  %v1914_v15 = vmax.f32 %v1850_v9, 0.0  ;;  %v1843_v16 = vadd.f32 %v3144_v6, %v1772_v10  ;;  %v1851_v17 = vadd.f32 %v3144_v6, %v1780_v11  ;;  %1761 = vmatmul.mubr.bf16.gmra.mrb[116].mxu1 %v1350_v18 }
 0x27f   : > { %1970 = vst [vmem:[%s3160_s27] sm:$0xff] %v1906_v14  ;;  %1978 = vst [vmem:[%s3160_s27 + $0x40] sm:$0xff] %v1914_v15  ;;  %v1907_v19 = vmax.f32 %v1843_v16, 0.0  ;;  %v1915_v20 = vmax.f32 %v1851_v17, 0.0 }
 0x280   : > { %v1522_v21 = vpop.f32.mrb[132].mxu0  ;;  %v1554_v22 = vpop.f32.mrb[12].mxu1 }
 0x281   : > { %1971 = vst [vmem:[%s3160_s27 + $0x8] sm:$0xff] %v1907_v19  ;;  %1979 = vst [vmem:[%s3160_s27 + $0x48] sm:$0xff] %v1915_v20  ;;  %v1773_v23 = vmul.f32 %v3139_v63, %v1522_v21  ;;  %v1781_v42 = vmul.f32 %v3139_v63, %v1554_v22  ;;  %v1524_v25 = vpop.f32.mrb[133].mxu0  ;;  %v1556_v26 = vpop.f32.mrb[13].mxu1 }
 0x282   : > { %v1525_v27 = vpop.f32.mrb[134].mxu0  ;;  %v1557_v28 = vpop.f32.mrb[14].mxu1 }
 0x283   : > { %v1844_v29 = vadd.f32 %v3144_v6, %v1773_v23  ;;  %v1852_v30 = vadd.f32 %v3144_v6, %v1781_v42  ;;  %v1774_v0 = vmul.f32 %v3139_v63, %v1525_v27  ;;  %v1782_v31 = vmul.f32 %v3139_v63, %v1557_v28  ;;  %v1527_v32 = vpop.f32.mrb[135].mxu0  ;;  %v1559_v33 = vpop.f32.mrb[15].mxu1 }
 0x285   : > { %v1908_v34 = vmax.f32 %v1844_v29, 0.0  ;;  %v1916_v35 = vmax.f32 %v1852_v30, 0.0  ;;  %v1845_v36 = vadd.f32 %v3144_v6, %v1774_v0  ;;  %v1853_v37 = vadd.f32 %v3144_v6, %v1782_v31 }
 0x287   : > { %1972 = vst [vmem:[%s3160_s27 + $0x10] sm:$0xff] %v1908_v34  ;;  %1980 = vst [vmem:[%s3160_s27 + $0x50] sm:$0xff] %v1916_v35  ;;  %v1909_v38 = vmax.f32 %v1845_v36, 0.0  ;;  %v1917_v39 = vmax.f32 %v1853_v37, 0.0 }
 0x288   : > { %v1562_v40 = vpop.f32.mrb[16].mxu1 }
 0x289   : > { %1973 = vst [vmem:[%s3160_s27 + $0x18] sm:$0xff] %v1909_v38  ;;  %1981 = vst [vmem:[%s3160_s27 + $0x58] sm:$0xff] %v1917_v39  ;;  %v1783_v41 = vmul.f32 %v3139_v63, %v1562_v40  ;;  %v1564_v43 = vpop.f32.mrb[17].mxu1 }
 0x28a   : > { %v1565_v44 = vpop.f32.mrb[18].mxu1 }
 0x28b   : > { %v1854_v46 = vadd.f32 %v3144_v6, %v1783_v41  ;;  %v1784_v47 = vmul.f32 %v3139_v63, %v1565_v44  ;;  %v1567_v48 = vpop.f32.mrb[19].mxu1 }
 0x28d   : > { %v1918_v49 = vmax.f32 %v1854_v46, 0.0  ;;  %v1855_v50 = vadd.f32 %v3144_v6, %v1784_v47 }
 0x28f   : > { %1982 = vst [vmem:[%s3160_s27 + $0x60] sm:$0xff] %v1918_v49  ;;  %v1919_v51 = vmax.f32 %v1855_v50, 0.0 }
 0x290   : > { %v1570_v24 = vpop.f32.mrb[20].mxu1 }
 0x291   : > { %1983 = vst [vmem:[%s3160_s27 + $0x68] sm:$0xff] %v1919_v51  ;;  %v1785_v52 = vmul.f32 %v3139_v63, %v1570_v24  ;;  %v1572_v53 = vpop.f32.mrb[21].mxu1 }
 0x292   : > { %v1573_v54 = vpop.f32.mrb[22].mxu1 }
 0x293   : > { %v1856_v55 = vadd.f32 %v3144_v6, %v1785_v52  ;;  %v1786_v57 = vmul.f32 %v3139_v63, %v1573_v54  ;;  %v1575_v58 = vpop.f32.mrb[23].mxu1 }
 0x295   : > { %v1920_v60 = vmax.f32 %v1856_v55, 0.0  ;;  %v1857_v62 = vadd.f32 %v3144_v6, %v1786_v57 }
 0x297   : > { %1984 = vst [vmem:[%s3160_s27 + $0x70] sm:$0xff] %v1920_v60  ;;  %v1921_v1 = vmax.f32 %v1857_v62, 0.0 }
 0x298   : > { %v1578_v2 = vpop.f32.mrb[24].mxu1 }
 0x299   : > { %1985 = vst [vmem:[%s3160_s27 + $0x78] sm:$0xff] %v1921_v1  ;;  %v1787_v3 = vmul.f32 %v3139_v63, %v1578_v2  ;;  %v1580_v56 = vpop.f32.mrb[25].mxu1 }
 0x29a   : > { %v1581_v4 = vpop.f32.mrb[26].mxu1 }
 0x29b   : > { %v1858_v5 = vadd.f32 %v3144_v6, %v1787_v3  ;;  %v1788_v59 = vmul.f32 %v3139_v63, %v1581_v4  ;;  %v1583_v18 = vpop.f32.mrb[27].mxu1 }
 0x29d   : > { %v1922_v7 = vmax.f32 %v1858_v5, 0.0  ;;  %v1859_v61 = vadd.f32 %v3144_v6, %v1788_v59 }
 0x29f   : > { %1986 = vst [vmem:[%s3160_s27 + $0x80] sm:$0xff] %v1922_v7  ;;  %v1923_v45 = vmax.f32 %v1859_v61, 0.0 }
 0x2a0   : > { %v1586_v8 = vpop.f32.mrb[28].mxu1 }
 0x2a1   : > { %1987 = vst [vmem:[%s3160_s27 + $0x88] sm:$0xff] %v1923_v45  ;;  %v1789_v9 = vmul.f32 %v3139_v63, %v1586_v8  ;;  %v1588_v10 = vpop.f32.mrb[29].mxu1 }
 0x2a2   : > { %v1589_v11 = vpop.f32.mrb[30].mxu1 }
 0x2a3   : > { %v1860_v12 = vadd.f32 %v3144_v6, %v1789_v9  ;;  %v1790_v13 = vmul.f32 %v3139_v63, %v1589_v11  ;;  %v1591_v14 = vpop.f32.mrb[31].mxu1 }
 0x2a5   : > { %v1924_v15 = vmax.f32 %v1860_v12, 0.0  ;;  %v1861_v16 = vadd.f32 %v3144_v6, %v1790_v13 }
 0x2a7   : > { %1988 = vst [vmem:[%s3160_s27 + $0x90] sm:$0xff] %v1924_v15  ;;  %v1925_v17 = vmax.f32 %v1861_v16, 0.0 }
 0x2a8   : > { %v1594_v19 = vpop.f32.mrb[32].mxu1 }
 0x2a9   : > { %1989 = vst [vmem:[%s3160_s27 + $0x98] sm:$0xff] %v1925_v17  ;;  %v1791_v20 = vmul.f32 %v3139_v63, %v1594_v19  ;;  %v1596_v21 = vpop.f32.mrb[33].mxu1 }
 0x2aa   : > { %v1597_v22 = vpop.f32.mrb[34].mxu1 }
 0x2ab   : > { %v1862_v23 = vadd.f32 %v3144_v6, %v1791_v20  ;;  %v1792_v42 = vmul.f32 %v3139_v63, %v1597_v22  ;;  %v1599_v25 = vpop.f32.mrb[35].mxu1 }
 0x2ad   : > { %v1926_v26 = vmax.f32 %v1862_v23, 0.0  ;;  %v1863_v27 = vadd.f32 %v3144_v6, %v1792_v42 }
 0x2af   : > { %1990 = vst [vmem:[%s3160_s27 + $0xa0] sm:$0xff] %v1926_v26  ;;  %v1927_v28 = vmax.f32 %v1863_v27, 0.0 }
 0x2b0   : > { %v1602_v29 = vpop.f32.mrb[36].mxu1 }
 0x2b1   : > { %1991 = vst [vmem:[%s3160_s27 + $0xa8] sm:$0xff] %v1927_v28  ;;  %v1793_v30 = vmul.f32 %v3139_v63, %v1602_v29  ;;  %v1604_v0 = vpop.f32.mrb[37].mxu1 }
 0x2b2   : > { %v1605_v31 = vpop.f32.mrb[38].mxu1 }
 0x2b3   : > { %v1864_v32 = vadd.f32 %v3144_v6, %v1793_v30  ;;  %v1794_v33 = vmul.f32 %v3139_v63, %v1605_v31  ;;  %v1607_v34 = vpop.f32.mrb[39].mxu1 }
 0x2b5   : > { %v1928_v35 = vmax.f32 %v1864_v32, 0.0  ;;  %v1865_v36 = vadd.f32 %v3144_v6, %v1794_v33 }
 0x2b7   : > { %1992 = vst [vmem:[%s3160_s27 + $0xb0] sm:$0xff] %v1928_v35  ;;  %v1929_v37 = vmax.f32 %v1865_v36, 0.0 }
 0x2b8   : > { %v1610_v38 = vpop.f32.mrb[40].mxu1 }
 0x2b9   : > { %1993 = vst [vmem:[%s3160_s27 + $0xb8] sm:$0xff] %v1929_v37  ;;  %v1795_v39 = vmul.f32 %v3139_v63, %v1610_v38  ;;  %v1612_v40 = vpop.f32.mrb[41].mxu1 }
 0x2ba   : > { %v1613_v41 = vpop.f32.mrb[42].mxu1 }
 0x2bb   : > { %v1866_v43 = vadd.f32 %v3144_v6, %v1795_v39  ;;  %v1796_v44 = vmul.f32 %v3139_v63, %v1613_v41  ;;  %v1615_v46 = vpop.f32.mrb[43].mxu1 }
 0x2bd   : > { %v1930_v47 = vmax.f32 %v1866_v43, 0.0  ;;  %v1867_v48 = vadd.f32 %v3144_v6, %v1796_v44 }
 0x2bf   : > { %1994 = vst [vmem:[%s3160_s27 + $0xc0] sm:$0xff] %v1930_v47  ;;  %v1931_v49 = vmax.f32 %v1867_v48, 0.0 }
 0x2c0   : > { %v1618_v50 = vpop.f32.mrb[44].mxu1 }
 0x2c1   : > { %1995 = vst [vmem:[%s3160_s27 + $0xc8] sm:$0xff] %v1931_v49  ;;  %v1797_v51 = vmul.f32 %v3139_v63, %v1618_v50  ;;  %v1620_v24 = vpop.f32.mrb[45].mxu1 }
 0x2c2   : > { %v1621_v52 = vpop.f32.mrb[46].mxu1 }
 0x2c3   : > { %v1868_v53 = vadd.f32 %v3144_v6, %v1797_v51  ;;  %v1798_v54 = vmul.f32 %v3139_v63, %v1621_v52  ;;  %v1623_v55 = vpop.f32.mrb[47].mxu1 }
 0x2c5   : > { %v1932_v57 = vmax.f32 %v1868_v53, 0.0  ;;  %v1869_v58 = vadd.f32 %v3144_v6, %v1798_v54 }
 0x2c7   : > { %1996 = vst [vmem:[%s3160_s27 + $0xd0] sm:$0xff] %v1932_v57  ;;  %v1933_v60 = vmax.f32 %v1869_v58, 0.0 }
 0x2c8   : > { %v1626_v62 = vpop.f32.mrb[48].mxu1 }
 0x2c9   : > { %1997 = vst [vmem:[%s3160_s27 + $0xd8] sm:$0xff] %v1933_v60  ;;  %v1799_v1 = vmul.f32 %v3139_v63, %v1626_v62  ;;  %v1628_v2 = vpop.f32.mrb[49].mxu1 }
 0x2ca   : > { %v1629_v3 = vpop.f32.mrb[50].mxu1 }
 0x2cb   : > { %v1870_v56 = vadd.f32 %v3144_v6, %v1799_v1  ;;  %v1800_v4 = vmul.f32 %v3139_v63, %v1629_v3  ;;  %v1631_v5 = vpop.f32.mrb[51].mxu1 }
 0x2cd   : > { %v1934_v59 = vmax.f32 %v1870_v56, 0.0  ;;  %v1871_v18 = vadd.f32 %v3144_v6, %v1800_v4 }
 0x2cf   : > { %1998 = vst [vmem:[%s3160_s27 + $0xe0] sm:$0xff] %v1934_v59  ;;  %v1935_v7 = vmax.f32 %v1871_v18, 0.0 }
 0x2d0   : > { %v1634_v61 = vpop.f32.mrb[52].mxu1 }
 0x2d1   : > { %1999 = vst [vmem:[%s3160_s27 + $0xe8] sm:$0xff] %v1935_v7  ;;  %v1801_v45 = vmul.f32 %v3139_v63, %v1634_v61  ;;  %v1636_v8 = vpop.f32.mrb[53].mxu1 }
 0x2d2   : > { %v1637_v9 = vpop.f32.mrb[54].mxu1 }
 0x2d3   : > { %v1872_v10 = vadd.f32 %v3144_v6, %v1801_v45  ;;  %v1802_v11 = vmul.f32 %v3139_v63, %v1637_v9  ;;  %v1639_v12 = vpop.f32.mrb[55].mxu1 }
 0x2d5   : > { %v1936_v13 = vmax.f32 %v1872_v10, 0.0  ;;  %v1873_v14 = vadd.f32 %v3144_v6, %v1802_v11 }
 0x2d7   : > { %2000 = vst [vmem:[%s3160_s27 + $0xf0] sm:$0xff] %v1936_v13  ;;  %v1937_v15 = vmax.f32 %v1873_v14, 0.0 }
 0x2d8   : > { %v1642_v16 = vpop.f32.mrb[56].mxu1 }
 0x2d9   : > { %2001 = vst [vmem:[%s3160_s27 + $0xf8] sm:$0xff] %v1937_v15  ;;  %v1803_v17 = vmul.f32 %v3139_v63, %v1642_v16  ;;  %v1644_v19 = vpop.f32.mrb[57].mxu1 }
 0x2da   : > { %v1645_v20 = vpop.f32.mrb[58].mxu1 }
 0x2db   : > { %v1874_v21 = vadd.f32 %v3144_v6, %v1803_v17  ;;  %v1804_v22 = vmul.f32 %v3139_v63, %v1645_v20  ;;  %v1647_v23 = vpop.f32.mrb[59].mxu1 }
 0x2dd   : > { %v1938_v42 = vmax.f32 %v1874_v21, 0.0  ;;  %v1875_v25 = vadd.f32 %v3144_v6, %v1804_v22 }
 0x2df   : > { %2002 = vst [vmem:[%s3160_s27 + $0x100] sm:$0xff] %v1938_v42  ;;  %v1939_v26 = vmax.f32 %v1875_v25, 0.0 }
 0x2e0   : > { %v1650_v27 = vpop.f32.mrb[60].mxu1 }
 0x2e1   : > { %2003 = vst [vmem:[%s3160_s27 + $0x108] sm:$0xff] %v1939_v26  ;;  %v1805_v28 = vmul.f32 %v3139_v63, %v1650_v27  ;;  %v1652_v29 = vpop.f32.mrb[61].mxu1 }
 0x2e2   : > { %v1653_v30 = vpop.f32.mrb[62].mxu1 }
 0x2e3   : > { %v1876_v0 = vadd.f32 %v3144_v6, %v1805_v28  ;;  %v1806_v31 = vmul.f32 %v3139_v63, %v1653_v30  ;;  %v1655_v32 = vpop.f32.mrb[63].mxu1 }
 0x2e5   : > { %v1940_v33 = vmax.f32 %v1876_v0, 0.0  ;;  %v1877_v34 = vadd.f32 %v3144_v6, %v1806_v31 }
 0x2e7   : > { %2004 = vst [vmem:[%s3160_s27 + $0x110] sm:$0xff] %v1940_v33  ;;  %v1941_v35 = vmax.f32 %v1877_v34, 0.0 }
 0x2e8   : > { %v1658_v36 = vpop.f32.mrb[64].mxu1 }
 0x2e9   : > { %2005 = vst [vmem:[%s3160_s27 + $0x118] sm:$0xff] %v1941_v35  ;;  %v1807_v37 = vmul.f32 %v3139_v63, %v1658_v36  ;;  %v1660_v38 = vpop.f32.mrb[65].mxu1 }
 0x2ea   : > { %v1661_v39 = vpop.f32.mrb[66].mxu1 }
 0x2eb   : > { %v1878_v40 = vadd.f32 %v3144_v6, %v1807_v37  ;;  %v1808_v41 = vmul.f32 %v3139_v63, %v1661_v39  ;;  %v1663_v43 = vpop.f32.mrb[67].mxu1 }
 0x2ed   : > { %v1942_v44 = vmax.f32 %v1878_v40, 0.0  ;;  %v1879_v46 = vadd.f32 %v3144_v6, %v1808_v41 }
 0x2ef   : > { %2006 = vst [vmem:[%s3160_s27 + $0x120] sm:$0xff] %v1942_v44  ;;  %v1943_v47 = vmax.f32 %v1879_v46, 0.0 }
 0x2f0   : > { %v1666_v48 = vpop.f32.mrb[68].mxu1 }
 0x2f1   : > { %2007 = vst [vmem:[%s3160_s27 + $0x128] sm:$0xff] %v1943_v47  ;;  %v1809_v49 = vmul.f32 %v3139_v63, %v1666_v48  ;;  %v1668_v50 = vpop.f32.mrb[69].mxu1 }
 0x2f2   : > { %v1669_v51 = vpop.f32.mrb[70].mxu1 }
 0x2f3   : > { %v1880_v24 = vadd.f32 %v3144_v6, %v1809_v49  ;;  %v1810_v52 = vmul.f32 %v3139_v63, %v1669_v51  ;;  %v1671_v53 = vpop.f32.mrb[71].mxu1 }
 0x2f5   : > { %v1944_v54 = vmax.f32 %v1880_v24, 0.0  ;;  %v1881_v55 = vadd.f32 %v3144_v6, %v1810_v52 }
 0x2f7   : > { %2008 = vst [vmem:[%s3160_s27 + $0x130] sm:$0xff] %v1944_v54  ;;  %v1945_v57 = vmax.f32 %v1881_v55, 0.0 }
 0x2f8   : > { %v1674_v58 = vpop.f32.mrb[72].mxu1 }
 0x2f9   : > { %2009 = vst [vmem:[%s3160_s27 + $0x138] sm:$0xff] %v1945_v57  ;;  %v1811_v60 = vmul.f32 %v3139_v63, %v1674_v58  ;;  %v1676_v62 = vpop.f32.mrb[73].mxu1 }
 0x2fa   : > { %v1677_v1 = vpop.f32.mrb[74].mxu1 }
 0x2fb   : > { %v1882_v2 = vadd.f32 %v3144_v6, %v1811_v60  ;;  %v1812_v3 = vmul.f32 %v3139_v63, %v1677_v1  ;;  %v1679_v56 = vpop.f32.mrb[75].mxu1 }
 0x2fd   : > { %v1946_v4 = vmax.f32 %v1882_v2, 0.0  ;;  %v1883_v5 = vadd.f32 %v3144_v6, %v1812_v3 }
 0x2ff   : > { %2010 = vst [vmem:[%s3160_s27 + $0x140] sm:$0xff] %v1946_v4  ;;  %v1947_v59 = vmax.f32 %v1883_v5, 0.0 }
 0x300   : > { %v1682_v18 = vpop.f32.mrb[76].mxu1 }
 0x301   : > { %2011 = vst [vmem:[%s3160_s27 + $0x148] sm:$0xff] %v1947_v59  ;;  %v1813_v7 = vmul.f32 %v3139_v63, %v1682_v18  ;;  %v1684_v61 = vpop.f32.mrb[77].mxu1 }
 0x302   : > { %v1685_v45 = vpop.f32.mrb[78].mxu1 }
 0x303   : > { %v1884_v8 = vadd.f32 %v3144_v6, %v1813_v7  ;;  %v1814_v9 = vmul.f32 %v3139_v63, %v1685_v45  ;;  %v1687_v10 = vpop.f32.mrb[79].mxu1 }
 0x305   : > { %v1948_v11 = vmax.f32 %v1884_v8, 0.0  ;;  %v1885_v12 = vadd.f32 %v3144_v6, %v1814_v9 }
 0x307   : > { %2012 = vst [vmem:[%s3160_s27 + $0x150] sm:$0xff] %v1948_v11  ;;  %v1949_v13 = vmax.f32 %v1885_v12, 0.0 }
 0x308   : > { %v1690_v14 = vpop.f32.mrb[80].mxu1 }
 0x309   : > { %2013 = vst [vmem:[%s3160_s27 + $0x158] sm:$0xff] %v1949_v13  ;;  %v1815_v15 = vmul.f32 %v3139_v63, %v1690_v14  ;;  %v1692_v16 = vpop.f32.mrb[81].mxu1 }
 0x30a   : > { %v1693_v17 = vpop.f32.mrb[82].mxu1 }
 0x30b   : > { %v1886_v19 = vadd.f32 %v3144_v6, %v1815_v15  ;;  %v1816_v20 = vmul.f32 %v3139_v63, %v1693_v17  ;;  %v1695_v21 = vpop.f32.mrb[83].mxu1 }
 0x30d   : > { %v1950_v22 = vmax.f32 %v1886_v19, 0.0  ;;  %v1887_v23 = vadd.f32 %v3144_v6, %v1816_v20 }
 0x30f   : > { %2014 = vst [vmem:[%s3160_s27 + $0x160] sm:$0xff] %v1950_v22  ;;  %v1951_v42 = vmax.f32 %v1887_v23, 0.0 }
 0x310   : > { %v1698_v25 = vpop.f32.mrb[84].mxu1 }
 0x311   : > { %2015 = vst [vmem:[%s3160_s27 + $0x168] sm:$0xff] %v1951_v42  ;;  %v1817_v26 = vmul.f32 %v3139_v63, %v1698_v25  ;;  %v1700_v27 = vpop.f32.mrb[85].mxu1 }
 0x312   : > { %v1701_v28 = vpop.f32.mrb[86].mxu1 }
 0x313   : > { %v1888_v29 = vadd.f32 %v3144_v6, %v1817_v26  ;;  %v1818_v30 = vmul.f32 %v3139_v63, %v1701_v28  ;;  %v1703_v0 = vpop.f32.mrb[87].mxu1 }
 0x315   : > { %v1952_v31 = vmax.f32 %v1888_v29, 0.0  ;;  %v1889_v32 = vadd.f32 %v3144_v6, %v1818_v30 }
 0x317   : > { %2016 = vst [vmem:[%s3160_s27 + $0x170] sm:$0xff] %v1952_v31  ;;  %v1953_v33 = vmax.f32 %v1889_v32, 0.0 }
 0x318   : > { %v1706_v34 = vpop.f32.mrb[88].mxu1 }
 0x319   : > { %2017 = vst [vmem:[%s3160_s27 + $0x178] sm:$0xff] %v1953_v33  ;;  %v1819_v35 = vmul.f32 %v3139_v63, %v1706_v34  ;;  %v1708_v36 = vpop.f32.mrb[89].mxu1 }
 0x31a   : > { %v1709_v37 = vpop.f32.mrb[90].mxu1 }
 0x31b   : > { %v1890_v38 = vadd.f32 %v3144_v6, %v1819_v35  ;;  %v1820_v39 = vmul.f32 %v3139_v63, %v1709_v37  ;;  %v1711_v40 = vpop.f32.mrb[91].mxu1 }
 0x31d   : > { %v1954_v41 = vmax.f32 %v1890_v38, 0.0  ;;  %v1891_v43 = vadd.f32 %v3144_v6, %v1820_v39 }
 0x31f   : > { %2018 = vst [vmem:[%s3160_s27 + $0x180] sm:$0xff] %v1954_v41  ;;  %v1955_v44 = vmax.f32 %v1891_v43, 0.0 }
 0x320   : > { %v1714_v46 = vpop.f32.mrb[92].mxu1 }
 0x321   : > { %2019 = vst [vmem:[%s3160_s27 + $0x188] sm:$0xff] %v1955_v44  ;;  %v1821_v47 = vmul.f32 %v3139_v63, %v1714_v46  ;;  %v1716_v48 = vpop.f32.mrb[93].mxu1 }
 0x322   : > { %v1717_v49 = vpop.f32.mrb[94].mxu1 }
 0x323   : > { %v1892_v50 = vadd.f32 %v3144_v6, %v1821_v47  ;;  %v1822_v51 = vmul.f32 %v3139_v63, %v1717_v49  ;;  %v1719_v24 = vpop.f32.mrb[95].mxu1 }
 0x325   : > { %v1956_v52 = vmax.f32 %v1892_v50, 0.0  ;;  %v1893_v53 = vadd.f32 %v3144_v6, %v1822_v51 }
 0x327   : > { %2020 = vst [vmem:[%s3160_s27 + $0x190] sm:$0xff] %v1956_v52  ;;  %v1957_v54 = vmax.f32 %v1893_v53, 0.0 }
 0x328   : > { %v1722_v55 = vpop.f32.mrb[96].mxu1 }
 0x329   : > { %2021 = vst [vmem:[%s3160_s27 + $0x198] sm:$0xff] %v1957_v54  ;;  %v1823_v57 = vmul.f32 %v3139_v63, %v1722_v55  ;;  %v1724_v58 = vpop.f32.mrb[97].mxu1 }
 0x32a   : > { %v1725_v60 = vpop.f32.mrb[98].mxu1 }
 0x32b   : > { %v1894_v62 = vadd.f32 %v3144_v6, %v1823_v57  ;;  %v1824_v1 = vmul.f32 %v3139_v63, %v1725_v60  ;;  %v1727_v2 = vpop.f32.mrb[99].mxu1 }
 0x32d   : > { %v1958_v3 = vmax.f32 %v1894_v62, 0.0  ;;  %v1895_v56 = vadd.f32 %v3144_v6, %v1824_v1 }
 0x32f   : > { %2022 = vst [vmem:[%s3160_s27 + $0x1a0] sm:$0xff] %v1958_v3  ;;  %v1959_v4 = vmax.f32 %v1895_v56, 0.0 }
 0x330   : > { %v1730_v5 = vpop.f32.mrb[100].mxu1 }
 0x331   : > { %2023 = vst [vmem:[%s3160_s27 + $0x1a8] sm:$0xff] %v1959_v4  ;;  %v1825_v59 = vmul.f32 %v3139_v63, %v1730_v5  ;;  %v1732_v18 = vpop.f32.mrb[101].mxu1 }
 0x332   : > { %v1733_v7 = vpop.f32.mrb[102].mxu1 }
 0x333   : > { %v1896_v61 = vadd.f32 %v3144_v6, %v1825_v59  ;;  %v1826_v45 = vmul.f32 %v3139_v63, %v1733_v7  ;;  %v1735_v8 = vpop.f32.mrb[103].mxu1 }
 0x335   : > { %v1960_v9 = vmax.f32 %v1896_v61, 0.0  ;;  %v1897_v10 = vadd.f32 %v3144_v6, %v1826_v45 }
 0x337   : > { %2024 = vst [vmem:[%s3160_s27 + $0x1b0] sm:$0xff] %v1960_v9  ;;  %v1961_v11 = vmax.f32 %v1897_v10, 0.0 }
 0x338   : > { %v1738_v12 = vpop.f32.mrb[104].mxu1 }
 0x339   : > { %2025 = vst [vmem:[%s3160_s27 + $0x1b8] sm:$0xff] %v1961_v11  ;;  %v1827_v13 = vmul.f32 %v3139_v63, %v1738_v12  ;;  %v1740_v14 = vpop.f32.mrb[105].mxu1 }
 0x33a   : > { %v1741_v15 = vpop.f32.mrb[106].mxu1 }
 0x33b   : > { %v1898_v16 = vadd.f32 %v3144_v6, %v1827_v13  ;;  %v1828_v17 = vmul.f32 %v3139_v63, %v1741_v15  ;;  %v1743_v19 = vpop.f32.mrb[107].mxu1 }
 0x33d   : > { %v1962_v20 = vmax.f32 %v1898_v16, 0.0  ;;  %v1899_v21 = vadd.f32 %v3144_v6, %v1828_v17 }
 0x33f   : > { %2026 = vst [vmem:[%s3160_s27 + $0x1c0] sm:$0xff] %v1962_v20  ;;  %v1963_v22 = vmax.f32 %v1899_v21, 0.0 }
 0x340   : > { %v1746_v23 = vpop.f32.mrb[108].mxu1 }
 0x341   : > { %2027 = vst [vmem:[%s3160_s27 + $0x1c8] sm:$0xff] %v1963_v22  ;;  %v1829_v42 = vmul.f32 %v3139_v63, %v1746_v23  ;;  %v1748_v25 = vpop.f32.mrb[109].mxu1 }
 0x342   : > { %v1749_v26 = vpop.f32.mrb[110].mxu1 }
 0x343   : > { %v1900_v27 = vadd.f32 %v3144_v6, %v1829_v42  ;;  %v1830_v28 = vmul.f32 %v3139_v63, %v1749_v26  ;;  %v1751_v29 = vpop.f32.mrb[111].mxu1 }
 0x345   : > { %v1964_v30 = vmax.f32 %v1900_v27, 0.0  ;;  %v1901_v0 = vadd.f32 %v3144_v6, %v1830_v28 }
 0x347   : > { %2028 = vst [vmem:[%s3160_s27 + $0x1d0] sm:$0xff] %v1964_v30  ;;  %v1965_v31 = vmax.f32 %v1901_v0, 0.0 }
 0x348   : > { %v1754_v32 = vpop.f32.mrb[112].mxu1 }
 0x349   : > { %2029 = vst [vmem:[%s3160_s27 + $0x1d8] sm:$0xff] %v1965_v31  ;;  %v1831_v33 = vmul.f32 %v3139_v63, %v1754_v32  ;;  %v1756_v34 = vpop.f32.mrb[113].mxu1 }
 0x34a   : > { %v1757_v35 = vpop.f32.mrb[114].mxu1 }
 0x34b   : > { %v1902_v36 = vadd.f32 %v3144_v6, %v1831_v33  ;;  %v1832_v37 = vmul.f32 %v3139_v63, %v1757_v35  ;;  %v1759_v38 = vpop.f32.mrb[115].mxu1 }
 0x34d   : > { %v1966_v39 = vmax.f32 %v1902_v36, 0.0  ;;  %v1903_v40 = vadd.f32 %v3144_v6, %v1832_v37 }
 0x34f   : > { %2030 = vst [vmem:[%s3160_s27 + $0x1e0] sm:$0xff] %v1966_v39  ;;  %v1967_v41 = vmax.f32 %v1903_v40, 0.0 }
 0x350   : > { %v1762_v43 = vpop.f32.mrb[116].mxu1 }
 0x351   : > { %2031 = vst [vmem:[%s3160_s27 + $0x1e8] sm:$0xff] %v1967_v41  ;;  %v1833_v44 = vmul.f32 %v3139_v63, %v1762_v43  ;;  %v1764_v46 = vpop.f32.mrb[117].mxu1 }
 0x352   : > { %v1765_v47 = vpop.f32.mrb[118].mxu1 }
 0x353   : > { %v1904_v48 = vadd.f32 %v3144_v6, %v1833_v44  ;;  %v1834_v49 = vmul.f32 %v3139_v63, %v1765_v47  ;;  %v1767_v50 = vpop.f32.mrb[119].mxu1  ;;  %2041 = sbr.rel (!%p3444_p9) target bundleno = 886 (0x376), region = 64 }
 0x355   : > { %v1968_v51 = vmax.f32 %v1904_v48, 0.0  ;;  %v1905_v24 = vadd.f32 %v3144_v6, %v1834_v49 }
 0x357   : > { %2032 = vst [vmem:[%s3160_s27 + $0x1f0] sm:$0xff] %v1968_v51  ;;  %v1969_v52 = vmax.f32 %v1905_v24, 0.0 }
 0x359   : > { %2033 = vst [vmem:[%s3160_s27 + $0x1f8] sm:$0xff] %v1969_v52 }
 0x35a   : > { %s3454_s13 = smov (!%p2044_p10, %s2043_s13), 64 }
 0x35b   : > { %s3362_s11 = sshll.u32 %s3454_s13, 7 }
 0x35c   : > { %s2048_s19 = ssub.s32 8192, %s3362_s11 }
 0x35d   : > { %2049 = vsyncadd %s2035_s22, %s2048_s19  ;;  %p2199_p1 = scmp.ne.s32.totalorder %s3362_s11, 0  ;;  %s2206_s15 = sshll.u32 %s2584_s2, 13 }
 0x35e   : > { %s3372_s25 = scalar_lea.hbm %s3428_s7, %s2206_s15  ;;  %s2054_s26 = sshll.u32 %s3160_s27, 4  ;;  %s3375_s26 = int_to_ptr.vmem [resolvable:$true] %s2054_s26 }
 0x35f   : > { %s2432_s14 = scalar_lea.vmem %s3375_s26, %s3362_s11  ;;  %s2514_s17 = smov [#allocation10]  }
 0x360   : > { %p2433_p3 = scmp.ne.s32.totalorder %s3375_s26, %s2432_s14  ;;  %s2436_s20 = sshll.u32 %s2514_s17, 4  ;;  %s2437_s20 = int_to_ptr.vmem [resolvable:$false] %s2436_s20 }
 0x361   : > { %s2438_s2 = scalar_lea.vmem %s2437_s20, 16384  ;;  %p2439_p11 = scmp.lt.s32.totalorder %s3375_s26, %s2437_s20 }
 0x362   : > { %p2434_p5 = pnand %p2433_p3, %p2199_p1  ;;  %p2440_p13 = scmp.lt.s32.totalorder %s2438_s2, %s2432_s14 }
 0x364   : > { %p2435_p6 = pneg %p2434_p5  ;;  %p2441_p0 = por %p2440_p13, %p2439_p11 }
 0x366   : > { %p2442_p12 = pnand %p2441_p0, %p2435_p6 }
 0x368   : > { %2445 = shalt.err (!%p2442_p12)
}
 0x369   : > { %s2446_s5 = scalar_lea.hbm %s3372_s25, %s3362_s11  ;;  %s2450_s27 = scalar_lea.hbm %s3428_s7, 16000 }
 0x36a   : > { %p2447_p7 = scmp.ne.s32.totalorder %s3372_s25, %s2446_s5  ;;  %p2451_p9 = scmp.lt.u32.totalorder %s3372_s25, %s3428_s7 }
 0x36b   : > { %p2452_p10 = scmp.lt.u32.totalorder %s2450_s27, %s2446_s5  ;;  %p2454_p5 = scmp.lt.u32.totalorder %s2446_s5, %s3372_s25 }
 0x36c   : > { %p2448_p2 = pnand %p2447_p7, %p2199_p1 }
 0x36d   : > { %p2453_p3 = por %p2452_p10, %p2451_p9 }
 0x36e   : > { %p2449_p8 = pneg %p2448_p2 }
 0x36f   : > { %p2455_p6 = por %p2454_p5, %p2453_p3 }
 0x371   : > { %p2456_p11 = pnand %p2455_p6, %p2449_p8 }
 0x373   : > { %2459 = shalt.err (!%p2456_p11)
}
 0x374   : > { %s2515_s19 = smov 128   ;;  %s2516_s15 = smov 8  }
 0x375   : > { %2060 = dma.vmem_to_hbm [thread:$0]  (%p2199_p1), %s3375_s26, %s3362_s11, %s3372_s25, %s2035_s22, %s2515_s19, %s2515_s19, %s2516_s15  }
 0x376 PF: > { %s2069_s21 = sand.u32 1, %s2490_s28   ;;  %p3445_p13 = scmp.ne.s32.totalorder %s3436_s16, 0 }
 0x377   : > { %s2070_s24 = scalar_lea.sflag [#allocation6], %s2069_s21 }
 0x378   : > { %p2257_p0 = pnand %p2150_p4, %p3445_p13 }
 0x37a   : > { %2485 = dma.done.wait (!%p2257_p0), %s2070_s24, 8192  }
 0x37b   : > { %2487 = vsyncadd (!%p2257_p0), %s2070_s24, 4294959104  ;;  %s3446_s14 = sld [smem:[#allocation14_spill]]  ;;  %p23_p12 = scmp.ge.s32.totalorder %s2588_s9, 4  }
 0x37c   : > { %s3447_s28 = smov %s2494_s29  ;;  %s3448_s29 = smov %s2498_s30 }
 0x37d   : > { %s3450_s8 = smov %s2588_s9  ;;  %25 = sbr.rel (!%p23_p12) target bundleno = 9 (0x9), region = 101 }
 0x381   : > { %s3449_s30 = smov %s3446_s14 }
 0x384   :  { %2075 = vsyncpa [#allocation5], 1 }
 0x385   :  { %2077 = vsyncpa [#allocation5 + $0x1], 1 }
 0x386   :  { %2078 = vsyncpa [#allocation8], 1 }
 0x387   :  { %2079 = vsyncpa [#allocation6], 1 }
 0x388   :  { %2081 = vsyncpa [#allocation6 + $0x1], 1 }

</bundles_post_ra>
